<compile_context>
chip_gen: v7x
topology: tpu7x:2x2x1
jax: 0.10.0
libtpu: 0.0.40
codegen_flags: <defaults>
</compile_context>

<pallas_src>
import functools

import jax
import jax.numpy as jnp
import numpy as np
from jax.experimental import pallas as pl
from jax.experimental.pallas import tpu as pltpu


def _make_kernel(*, B, G, D, Lmax, steps_per_chunk, w_dtype):
    GL = G * Lmax
    f32 = jnp.float32
    exact_f32 = np.dtype(w_dtype) == np.dtype(np.float32)

    def kernel(idx_ref, bnd_ref, w_hbm, out_ref, gbuf, copy_sem):
        # idx_ref : SMEM (N,)           int32  global row ids (scalar prefetch)
        # bnd_ref : SMEM (T*B + 1,)     int32  bag boundaries = offsets ++ [N]
        # w_hbm   : HBM  (Vtot, D)      weight, never auto-copied
        # out_ref : VMEM (B, G*D)       this step's column slice of (B, T*D)
        # gbuf    : VMEM (2*G*Lmax, D)  double-buffered gather staging
        # copy_sem: DMA semaphores (2,) one per buffer slot
        c = pl.program_id(0)                 # core chunk   ("parallel")
        s = pl.program_id(1)                 # step in chunk ("arbitrary")
        step = c * steps_per_chunk + s
        slot = s & 1                         # buffer slot of THIS step

        # ---- issue the row gather of one step (G tables) into one slot ------
        def issue(step_idx, slot_idx):
            buf_base = slot_idx * GL
            for g in range(G):               # static unroll over tables
                tbl = step_idx * G + g
                start = bnd_ref[tbl * B]
                n = bnd_ref[tbl * B + B] - start
                dst0 = buf_base + g * Lmax

                @pl.loop(0, n)               # all row copies left in flight
                def _issue_row(j):
                    row = idx_ref[start + j]
                    pltpu.make_async_copy(
                        w_hbm.at[pl.ds(row, 1), :],
                        gbuf.at[pl.ds(dst0 + j, 1), :],
                        copy_sem.at[slot_idx],
                    ).start()
                # TODO(synk): sort/dedupe hot ids per table in the wrapper so
                # repeated / contiguous rows collapse into fewer, larger DMAs.

        # ---- first step on this core: make staging finite once, prime slot 0
        @pl.when(s == 0)
        def _prime():
            # Padded tail rows must never hold NaN/Inf bit patterns from a
            # previous kernel (0 * NaN != 0); later steps reuse old finite rows.
            gbuf[...] = jnp.zeros_like(gbuf)
            issue(c * steps_per_chunk, 0)

        # ---- prefetch NEXT step's rows into the other slot (hides DMA) ------
        @pl.when(s + 1 < steps_per_chunk)
        def _prefetch_next():
            issue(step + 1, 1 - slot)

        # ---- hoist every SMEM scalar read for this step above the waits -----
        base = step * G
        starts, n_valids, local_offs = [], [], []
        for g in range(G):
            st = bnd_ref[(base + g) * B]
            starts.append(st)
            n_valids.append(bnd_ref[(base + g) * B + B] - st)
            local_offs.append(
                [bnd_ref[(base + g) * B + b] - st for b in range(B)])
        n_rows_step = bnd_ref[(base + G) * B] - bnd_ref[base * B]

        # ---- wait for this step's gathered rows ------------------------------
        # The copies were issued on the previous step (or in the prime), so the
        # data has already landed and these waits are ~immediate. Each copy is
        # exactly one (1, D) row, so each wait consumes one row's byte count.
        @pl.loop(0, n_rows_step)
        def _wait_row(j):
            pltpu.make_async_copy(w_hbm.at[pl.ds(0, 1), :],
                                  gbuf.at[pl.ds(0, 1), :],
                                  copy_sem.at[slot]).wait()

        # ---- per-table bag mean via a small MXU matmul -----------------------
        col = jax.lax.broadcasted_iota(jnp.int32, (1, Lmax), 1)
        row_id = jax.lax.broadcasted_iota(jnp.int32, (B, Lmax), 0)
        for g in range(G):
            # bag id of each local slot (-1 on padded slots), built purely from
            # SMEM scalars: no extra pipelined "bag map" input stream.
            bag_id = jnp.full((1, Lmax), -1, dtype=jnp.int32)
            for b in range(B):
                bag_id = jnp.where(col >= local_offs[g][b], b, bag_id)
            bag_id = jnp.where(col < n_valids[g], bag_id, -1)
            seg = (row_id == bag_id).astype(f32)                 # (B, Lmax) 0/1
            cnt = jnp.sum(seg, axis=-1, keepdims=True)           # (B, 1)

            off = pl.multiple_of(slot * GL + g * Lmax, 8)
            vals = gbuf[pl.ds(off, Lmax), :]                     # (Lmax, D)
            if exact_f32:
                summed = jnp.dot(seg, vals, preferred_element_type=f32,
                                 precision=jax.lax.Precision.HIGHEST)
            else:   # e.g. bf16 weights: seg (0/1) is exact in bf16, MXU-native
                summed = jnp.dot(seg.astype(vals.dtype), vals,
                                 preferred_element_type=f32)
            mean = summed / jnp.maximum(cnt, 1.0)  # empty bag -> 0 (exact divide)
            out_ref[:, g * D:(g + 1) * D] = mean.astype(out_ref.dtype)
        # TODO(synk): per_sample_weights path (optional arg) is not implemented.

    return kernel


@functools.partial(jax.jit, static_argnums=(3, 4, 5))
def parallel_tablewise_embedding_bag(indices, offsets, weight, num_tables,
                                     batch_size, max_indices_per_table):
    """Forward of ParallelFreqAwareEmbeddingBagTablewiseSpiltCache (world_size=1).

    `max_indices_per_table` is a STATIC upper bound on the number of indices a
    single table sees per batch (keeps every shape static / cached); it must be
    a true upper bound. Layout assumes table-major contiguous offsets with
    include_last_offset=False and GLOBAL ids into the stacked weight.
    """
    T, B = int(num_tables), int(batch_size)
    _, D = weight.shape
    N = indices.shape[0]
    assert D % 128 == 0, "pad embedding_dim to a multiple of 128 (lane-dense stores)"

    # Tables per grid step (amortizes per-step overhead, widens output stores).
    G = 2 if T % 2 == 0 else 1
    steps = T // G
    # Outer "parallel" axis so a 2-TensorCore part (v7x) can split the step
    # range across cores; each core keeps its own scratch / prefetch state.
    chunks = 2 if steps % 2 == 0 else 1
    steps_per_chunk = steps // chunks

    Lmax = max(int(max_indices_per_table), 1)
    Lmax = ((Lmax + 7) // 8) * 8                 # sublane-friendly staging rows

    indices = indices.astype(jnp.int32)
    offsets = offsets.astype(jnp.int32)
    bounds = jnp.concatenate([offsets, jnp.array([N], dtype=jnp.int32)])  # (T*B+1,)
    # TODO(synk): for production-sized N, the (N,) scalar-prefetch will not fit
    # SMEM (1-D SMEM pads to next_pow2(4N) bytes); DMA each step's index slice
    # from HBM instead of prefetching all indices.

    itemsize = np.dtype(weight.dtype).itemsize
    gbuf_rows = 2 * G * Lmax                     # double-buffered staging
    gbuf_bytes = gbuf_rows * D * itemsize
    out_blk_bytes = B * G * D * itemsize
    # Explicit VMEM budget (v7x: 64 MiB physical / 32 MiB default scoped limit).
    vmem_limit = int(max(32 << 20, min(64 << 20,
                                       4 * (gbuf_bytes + 2 * out_blk_bytes))))

    kernel = _make_kernel(B=B, G=G, D=D, Lmax=Lmax,
                          steps_per_chunk=steps_per_chunk, w_dtype=weight.dtype)

    out = pl.pallas_call(
        kernel,
        out_shape=jax.ShapeDtypeStruct((B, T * D), weight.dtype),
        grid_spec=pltpu.PrefetchScalarGridSpec(
            num_scalar_prefetch=2,                       # indices, bounds -> SMEM
            grid=(chunks, steps_per_chunk),
            in_specs=[pl.BlockSpec(memory_space=pl.ANY)],  # weight stays in HBM
            out_specs=pl.BlockSpec(
                (B, G * D),
                lambda c, s, idx, bnd: (0, c * steps_per_chunk + s)),
            scratch_shapes=[
                pltpu.VMEM((gbuf_rows, D), weight.dtype),  # gather double-buffer
                pltpu.SemaphoreType.DMA((2,)),             # one sem per slot
            ],
        ),
        compiler_params=pltpu.CompilerParams(
            dimension_semantics=("parallel", "arbitrary"),
            vmem_limit_bytes=vmem_limit),
    )(indices, bounds, weight)

    # torch.cat(local_output_list, dim=1) is produced directly by the kernel's
    # per-step (B, G*D) column blocks; world_size == 1 so
    # dual_all_to_all_tablewise is the identity.
    # TODO(synk): dual_all_to_all_tablewise / LFU cache management of
    # FreqAwareEmbeddingBag have no single-device Pallas equivalent.
    return out


def _reference(indices, offsets, weight, T, B, D):
    ind = np.asarray(indices)
    off = np.asarray(offsets)
    w = np.asarray(weight)
    bounds = np.concatenate([off, np.array([ind.shape[0]], dtype=off.dtype)])
    out = np.zeros((B, T * D), np.float32)
    for t in range(T):
        for b in range(B):
            s, e = int(bounds[t * B + b]), int(bounds[t * B + b + 1])
            if e > s:
                out[b, t * D:(t + 1) * D] = w[ind[s:e], :].mean(axis=0)
    return out


if __name__ == "__main__":
    # Small deterministic configuration (T=8, G=2 -> 2 chunks x 2 steps: both
    # buffer slots, the cross-step prefetch path, and both "cores" are exercised).
    T = 8          # global_tables_num, all on rank 0
    B = 8          # batch_size
    D = 128        # embedding_dim (multiple of 128 -> lane-dense output stores)
    vocab_sizes = [12, 20, 16, 24, 8, 40, 10, 30]
    table_offsets = [0]
    for v in vocab_sizes[:-1]:
        table_offsets.append(table_offsets[-1] + v)   # cumsum([0]+vocab)[:-1]
    Vtot = sum(vocab_sizes)

    key = jax.random.PRNGKey(0)
    kw, ki = jax.random.split(key, 2)

    # Stacked per-table embedding weights (row = global id).
    weight = jax.random.normal(kw, (Vtot, D), dtype=jnp.float32)

    # Deterministic bag lengths (includes empty bags); table 5 is fully empty.
    lengths = [[(2 * t + b) % 5 for b in range(B)] for t in range(T)]
    lengths[5] = [0] * B
    n_total = sum(sum(row) for row in lengths)
    raw = np.asarray(jax.device_get(
        jax.random.randint(ki, (n_total,), 0, 10 ** 6)))

    indices_list, offsets_list = [], []
    cum, p = 0, 0
    for t in range(T):
        for b in range(B):
            offsets_list.append(cum)
            for _ in range(lengths[t][b]):
                local = int(raw[p]) % vocab_sizes[t]
                indices_list.append(table_offsets[t] + local)
                p += 1
            cum += lengths[t][b]
    indices = jnp.array(indices_list, dtype=jnp.int32)   # (114,)
    offsets = jnp.array(offsets_list, dtype=jnp.int32)   # (64,) = T*B

    # Static per-table pooling bound (pure-Python config -> no device sync).
    max_per_table = max(sum(row) for row in lengths)

    out = parallel_tablewise_embedding_bag(
        indices, offsets, weight, T, B, max_per_table)
    out = jax.block_until_ready(out)

    ref = _reference(indices, offsets, weight, T, B, D)
    assert out.shape == (B, T * D), out.shape
    np.testing.assert_allclose(np.asarray(out), ref, rtol=1e-3, atol=1e-3)
    print("KERNEL_OK")
</pallas_src>

<mosaic_0001>
module attributes {stable_mosaic.version = 11 : i64} {
  func.func @kernel(%arg0: i32, %arg1: i32, %arg2: memref<114xi32, #tpu.memory_space<smem>>, %arg3: memref<65xi32, #tpu.memory_space<smem>>, %arg4: memref<160x128xf32, #tpu.memory_space<any>>, %arg5: memref<8x256xf32, #tpu.memory_space<vmem>>, %arg6: memref<96x128xf32, #tpu.memory_space<vmem>>, %arg7: memref<2x!tpu.dma_semaphore, #tpu.memory_space<semaphore_mem>>) attributes {dimension_semantics = [#tpu.dimension_semantics<parallel>, #tpu.dimension_semantics<arbitrary>], iteration_bounds = array<i64: 2, 2>, scalar_prefetch = 2 : i64, scratch_operands = 2 : i64, tpu.core_type = #tpu.core_type<tc>, window_params = [{}, {transform_indices = @transform_1, window_bounds = array<i64: 8, 256>}]} {
    %c2_i32 = arith.constant 2 : i32
    %0 = arith.muli %arg0, %c2_i32 : i32
    %1 = arith.addi %0, %arg1 : i32
    %c1_i32 = arith.constant 1 : i32
    %2 = arith.andi %arg1, %c1_i32 : i32
    %c0_i32 = arith.constant 0 : i32
    %3 = arith.cmpi eq, %arg1, %c0_i32 : i32
    %4 = arith.extui %3 : i1 to i32
    %c0_i32_0 = arith.constant 0 : i32
    %5 = arith.cmpi ne, %4, %c0_i32_0 : i32
    scf.if %5 {
      %cst_98 = arith.constant 0.000000e+00 : f32
      %251 = vector.broadcast %cst_98 : f32 to vector<96x128xf32>
      %c0_99 = arith.constant 0 : index
      %c0_100 = arith.constant 0 : index
      %252 = vector.load %arg6[%c0_99, %c0_100] : memref<96x128xf32, #tpu.memory_space<vmem>>, vector<96x128xf32>
      tpu.vector_store %arg6[%c0_99, %c0_100], %251 {strides = array<i32>} : memref<96x128xf32, #tpu.memory_space<vmem>>, vector<96x128xf32>,
      %c2_i32_101 = arith.constant 2 : i32
      %253 = arith.muli %arg0, %c2_i32_101 : i32
      %c2_i32_102 = arith.constant 2 : i32
      %254 = arith.muli %253, %c2_i32_102 : i32
      %c0_i32_103 = arith.constant 0 : i32
      %255 = arith.addi %254, %c0_i32_103 : i32
      %c8_i32_104 = arith.constant 8 : i32
      %256 = arith.muli %255, %c8_i32_104 : i32
      %257 = arith.index_cast %256 : i32 to index
      %258 = memref.load %arg3[%257] : memref<65xi32, #tpu.memory_space<smem>>
      %c8_i32_105 = arith.constant 8 : i32
      %259 = arith.muli %255, %c8_i32_105 : i32
      %c8_i32_106 = arith.constant 8 : i32
      %260 = arith.addi %259, %c8_i32_106 : i32
      %261 = arith.index_cast %260 : i32 to index
      %262 = memref.load %arg3[%261] : memref<65xi32, #tpu.memory_space<smem>>
      %263 = arith.subi %262, %258 : i32
      %c0_i32_107 = arith.constant 0 : i32
      %264 = arith.subi %263, %c0_i32_107 : i32
      %c1_i32_108 = arith.constant 1 : i32
      %c1_i32_109 = arith.constant 1 : i32
      %265 = arith.subi %c1_i32_108, %c1_i32_109 : i32
      %266 = arith.addi %264, %265 : i32
      %c1_i32_110 = arith.constant 1 : i32
      %267 = arith.divsi %266, %c1_i32_110 : i32
      %c1_i32_111 = arith.constant 1 : i32
      %c0_i32_112 = arith.constant 0 : i32
      %c0_i32_113 = arith.constant 0 : i32
      %268 = arith.subi %267, %c0_i32_113 : i32
      %269 = arith.addi %c0_i32_113, %268 : i32
      %c1_i32_114 = arith.constant 1 : i32
      scf.for %arg8 = %c0_i32_113 to %269 step %c1_i32_114  : i32 {
        %286 = arith.muli %arg8, %c1_i32_111 : i32
        %287 = arith.addi %c0_i32_112, %286 : i32
        %288 = arith.addi %258, %287 : i32
        %289 = arith.index_cast %288 : i32 to index
        %290 = memref.load %arg2[%289] : memref<114xi32, #tpu.memory_space<smem>>
        %c0_i32_128 = arith.constant 0 : i32
        %291 = arith.addi %c0_i32_128, %287 : i32
        %c0_i32_129 = arith.constant 0 : i32
        %c0_i32_130 = arith.constant 0 : i32
        %292 = tpu.memref_slice %arg4[%290, %c0_i32_130] : memref<160x128xf32, #tpu.memory_space<any>> -> memref<1x128xf32, #tpu.memory_space<any>>
        %c0_i32_131 = arith.constant 0 : i32
        %293 = tpu.memref_slice %arg6[%291, %c0_i32_131] : memref<96x128xf32, #tpu.memory_space<vmem>> -> memref<1x128xf32, #tpu.memory_space<vmem>>
        %294 = tpu.memref_slice %arg7[%c0_i32_129] : memref<2x!tpu.dma_semaphore, #tpu.memory_space<semaphore_mem>> -> memref<1x!tpu.dma_semaphore, #tpu.memory_space<semaphore_mem>>
        %295 = tpu.memref_squeeze %294 : memref<1x!tpu.dma_semaphore, #tpu.memory_space<semaphore_mem>> -> memref<!tpu.dma_semaphore, #tpu.memory_space<semaphore_mem>>
        tpu.enqueue_dma source(%292 : memref<1x128xf32, #tpu.memory_space<any>>) target(%293 : memref<1x128xf32, #tpu.memory_space<vmem>>) target_semaphore(%295 : memref<!tpu.dma_semaphore, #tpu.memory_space<semaphore_mem>>)
      }
      %c2_i32_115 = arith.constant 2 : i32
      %270 = arith.muli %253, %c2_i32_115 : i32
      %c1_i32_116 = arith.constant 1 : i32
      %271 = arith.addi %270, %c1_i32_116 : i32
      %c8_i32_117 = arith.constant 8 : i32
      %272 = arith.muli %271, %c8_i32_117 : i32
      %273 = arith.index_cast %272 : i32 to index
      %274 = memref.load %arg3[%273] : memref<65xi32, #tpu.memory_space<smem>>
      %c8_i32_118 = arith.constant 8 : i32
      %275 = arith.muli %271, %c8_i32_118 : i32
      %c8_i32_119 = arith.constant 8 : i32
      %276 = arith.addi %275, %c8_i32_119 : i32
      %277 = arith.index_cast %276 : i32 to index
      %278 = memref.load %arg3[%277] : memref<65xi32, #tpu.memory_space<smem>>
      %279 = arith.subi %278, %274 : i32
      %c0_i32_120 = arith.constant 0 : i32
      %280 = arith.subi %279, %c0_i32_120 : i32
      %c1_i32_121 = arith.constant 1 : i32
      %c1_i32_122 = arith.constant 1 : i32
      %281 = arith.subi %c1_i32_121, %c1_i32_122 : i32
      %282 = arith.addi %280, %281 : i32
      %c1_i32_123 = arith.constant 1 : i32
      %283 = arith.divsi %282, %c1_i32_123 : i32
      %c1_i32_124 = arith.constant 1 : i32
      %c0_i32_125 = arith.constant 0 : i32
      %c0_i32_126 = arith.constant 0 : i32
      %284 = arith.subi %283, %c0_i32_126 : i32
      %285 = arith.addi %c0_i32_126, %284 : i32
      %c1_i32_127 = arith.constant 1 : i32
      scf.for %arg8 = %c0_i32_126 to %285 step %c1_i32_127  : i32 {
        %286 = arith.muli %arg8, %c1_i32_124 : i32
        %287 = arith.addi %c0_i32_125, %286 : i32
        %288 = arith.addi %274, %287 : i32
        %289 = arith.index_cast %288 : i32 to index
        %290 = memref.load %arg2[%289] : memref<114xi32, #tpu.memory_space<smem>>
        %c24_i32_128 = arith.constant 24 : i32
        %291 = arith.addi %c24_i32_128, %287 : i32
        %c0_i32_129 = arith.constant 0 : i32
        %c0_i32_130 = arith.constant 0 : i32
        %292 = tpu.memref_slice %arg4[%290, %c0_i32_130] : memref<160x128xf32, #tpu.memory_space<any>> -> memref<1x128xf32, #tpu.memory_space<any>>
        %c0_i32_131 = arith.constant 0 : i32
        %293 = tpu.memref_slice %arg6[%291, %c0_i32_131] : memref<96x128xf32, #tpu.memory_space<vmem>> -> memref<1x128xf32, #tpu.memory_space<vmem>>
        %294 = tpu.memref_slice %arg7[%c0_i32_129] : memref<2x!tpu.dma_semaphore, #tpu.memory_space<semaphore_mem>> -> memref<1x!tpu.dma_semaphore, #tpu.memory_space<semaphore_mem>>
        %295 = tpu.memref_squeeze %294 : memref<1x!tpu.dma_semaphore, #tpu.memory_space<semaphore_mem>> -> memref<!tpu.dma_semaphore, #tpu.memory_space<semaphore_mem>>
        tpu.enqueue_dma source(%292 : memref<1x128xf32, #tpu.memory_space<any>>) target(%293 : memref<1x128xf32, #tpu.memory_space<vmem>>) target_semaphore(%295 : memref<!tpu.dma_semaphore, #tpu.memory_space<semaphore_mem>>)
      }
    } else {
    }
    %c1_i32_1 = arith.constant 1 : i32
    %6 = arith.addi %arg1, %c1_i32_1 : i32
    %c2_i32_2 = arith.constant 2 : i32
    %7 = arith.cmpi slt, %6, %c2_i32_2 : i32
    %8 = arith.extui %7 : i1 to i32
    %c0_i32_3 = arith.constant 0 : i32
    %9 = arith.cmpi ne, %8, %c0_i32_3 : i32
    scf.if %9 {
      %c1_i32_98 = arith.constant 1 : i32
      %251 = arith.addi %1, %c1_i32_98 : i32
      %c1_i32_99 = arith.constant 1 : i32
      %252 = arith.subi %c1_i32_99, %2 : i32
      %c48_i32_100 = arith.constant 48 : i32
      %253 = arith.muli %252, %c48_i32_100 : i32
      %c2_i32_101 = arith.constant 2 : i32
      %254 = arith.muli %251, %c2_i32_101 : i32
      %c0_i32_102 = arith.constant 0 : i32
      %255 = arith.addi %254, %c0_i32_102 : i32
      %c8_i32_103 = arith.constant 8 : i32
      %256 = arith.muli %255, %c8_i32_103 : i32
      %257 = arith.index_cast %256 : i32 to index
      %258 = memref.load %arg3[%257] : memref<65xi32, #tpu.memory_space<smem>>
      %c8_i32_104 = arith.constant 8 : i32
      %259 = arith.muli %255, %c8_i32_104 : i32
      %c8_i32_105 = arith.constant 8 : i32
      %260 = arith.addi %259, %c8_i32_105 : i32
      %261 = arith.index_cast %260 : i32 to index
      %262 = memref.load %arg3[%261] : memref<65xi32, #tpu.memory_space<smem>>
      %263 = arith.subi %262, %258 : i32
      %c0_i32_106 = arith.constant 0 : i32
      %264 = arith.addi %253, %c0_i32_106 : i32
      %c0_i32_107 = arith.constant 0 : i32
      %265 = arith.subi %263, %c0_i32_107 : i32
      %c1_i32_108 = arith.constant 1 : i32
      %c1_i32_109 = arith.constant 1 : i32
      %266 = arith.subi %c1_i32_108, %c1_i32_109 : i32
      %267 = arith.addi %265, %266 : i32
      %c1_i32_110 = arith.constant 1 : i32
      %268 = arith.divsi %267, %c1_i32_110 : i32
      %c1_i32_111 = arith.constant 1 : i32
      %c0_i32_112 = arith.constant 0 : i32
      %c0_i32_113 = arith.constant 0 : i32
      %269 = arith.subi %268, %c0_i32_113 : i32
      %270 = arith.addi %c0_i32_113, %269 : i32
      %c1_i32_114 = arith.constant 1 : i32
      scf.for %arg8 = %c0_i32_113 to %270 step %c1_i32_114  : i32 {
        %288 = arith.muli %arg8, %c1_i32_111 : i32
        %289 = arith.addi %c0_i32_112, %288 : i32
        %290 = arith.addi %258, %289 : i32
        %291 = arith.index_cast %290 : i32 to index
        %292 = memref.load %arg2[%291] : memref<114xi32, #tpu.memory_space<smem>>
        %293 = arith.addi %264, %289 : i32
        %c0_i32_129 = arith.constant 0 : i32
        %294 = tpu.memref_slice %arg4[%292, %c0_i32_129] : memref<160x128xf32, #tpu.memory_space<any>> -> memref<1x128xf32, #tpu.memory_space<any>>
        %c0_i32_130 = arith.constant 0 : i32
        %295 = tpu.memref_slice %arg6[%293, %c0_i32_130] : memref<96x128xf32, #tpu.memory_space<vmem>> -> memref<1x128xf32, #tpu.memory_space<vmem>>
        %296 = tpu.memref_slice %arg7[%252] : memref<2x!tpu.dma_semaphore, #tpu.memory_space<semaphore_mem>> -> memref<1x!tpu.dma_semaphore, #tpu.memory_space<semaphore_mem>>
        %297 = tpu.memref_squeeze %296 : memref<1x!tpu.dma_semaphore, #tpu.memory_space<semaphore_mem>> -> memref<!tpu.dma_semaphore, #tpu.memory_space<semaphore_mem>>
        tpu.enqueue_dma source(%294 : memref<1x128xf32, #tpu.memory_space<any>>) target(%295 : memref<1x128xf32, #tpu.memory_space<vmem>>) target_semaphore(%297 : memref<!tpu.dma_semaphore, #tpu.memory_space<semaphore_mem>>)
      }
      %c2_i32_115 = arith.constant 2 : i32
      %271 = arith.muli %251, %c2_i32_115 : i32
      %c1_i32_116 = arith.constant 1 : i32
      %272 = arith.addi %271, %c1_i32_116 : i32
      %c8_i32_117 = arith.constant 8 : i32
      %273 = arith.muli %272, %c8_i32_117 : i32
      %274 = arith.index_cast %273 : i32 to index
      %275 = memref.load %arg3[%274] : memref<65xi32, #tpu.memory_space<smem>>
      %c8_i32_118 = arith.constant 8 : i32
      %276 = arith.muli %272, %c8_i32_118 : i32
      %c8_i32_119 = arith.constant 8 : i32
      %277 = arith.addi %276, %c8_i32_119 : i32
      %278 = arith.index_cast %277 : i32 to index
      %279 = memref.load %arg3[%278] : memref<65xi32, #tpu.memory_space<smem>>
      %280 = arith.subi %279, %275 : i32
      %c24_i32_120 = arith.constant 24 : i32
      %281 = arith.addi %253, %c24_i32_120 : i32
      %c0_i32_121 = arith.constant 0 : i32
      %282 = arith.subi %280, %c0_i32_121 : i32
      %c1_i32_122 = arith.constant 1 : i32
      %c1_i32_123 = arith.constant 1 : i32
      %283 = arith.subi %c1_i32_122, %c1_i32_123 : i32
      %284 = arith.addi %282, %283 : i32
      %c1_i32_124 = arith.constant 1 : i32
      %285 = arith.divsi %284, %c1_i32_124 : i32
      %c1_i32_125 = arith.constant 1 : i32
      %c0_i32_126 = arith.constant 0 : i32
      %c0_i32_127 = arith.constant 0 : i32
      %286 = arith.subi %285, %c0_i32_127 : i32
      %287 = arith.addi %c0_i32_127, %286 : i32
      %c1_i32_128 = arith.constant 1 : i32
      scf.for %arg8 = %c0_i32_127 to %287 step %c1_i32_128  : i32 {
        %288 = arith.muli %arg8, %c1_i32_125 : i32
        %289 = arith.addi %c0_i32_126, %288 : i32
        %290 = arith.addi %275, %289 : i32
        %291 = arith.index_cast %290 : i32 to index
        %292 = memref.load %arg2[%291] : memref<114xi32, #tpu.memory_space<smem>>
        %293 = arith.addi %281, %289 : i32
        %c0_i32_129 = arith.constant 0 : i32
        %294 = tpu.memref_slice %arg4[%292, %c0_i32_129] : memref<160x128xf32, #tpu.memory_space<any>> -> memref<1x128xf32, #tpu.memory_space<any>>
        %c0_i32_130 = arith.constant 0 : i32
        %295 = tpu.memref_slice %arg6[%293, %c0_i32_130] : memref<96x128xf32, #tpu.memory_space<vmem>> -> memref<1x128xf32, #tpu.memory_space<vmem>>
        %296 = tpu.memref_slice %arg7[%252] : memref<2x!tpu.dma_semaphore, #tpu.memory_space<semaphore_mem>> -> memref<1x!tpu.dma_semaphore, #tpu.memory_space<semaphore_mem>>
        %297 = tpu.memref_squeeze %296 : memref<1x!tpu.dma_semaphore, #tpu.memory_space<semaphore_mem>> -> memref<!tpu.dma_semaphore, #tpu.memory_space<semaphore_mem>>
        tpu.enqueue_dma source(%294 : memref<1x128xf32, #tpu.memory_space<any>>) target(%295 : memref<1x128xf32, #tpu.memory_space<vmem>>) target_semaphore(%297 : memref<!tpu.dma_semaphore, #tpu.memory_space<semaphore_mem>>)
      }
    } else {
    }
    %c2_i32_4 = arith.constant 2 : i32
    %10 = arith.muli %1, %c2_i32_4 : i32
    %c0_i32_5 = arith.constant 0 : i32
    %11 = arith.addi %10, %c0_i32_5 : i32
    %c8_i32 = arith.constant 8 : i32
    %12 = arith.muli %11, %c8_i32 : i32
    %13 = arith.index_cast %12 : i32 to index
    %14 = memref.load %arg3[%13] : memref<65xi32, #tpu.memory_space<smem>>
    %c0_i32_6 = arith.constant 0 : i32
    %15 = arith.addi %10, %c0_i32_6 : i32
    %c8_i32_7 = arith.constant 8 : i32
    %16 = arith.muli %15, %c8_i32_7 : i32
    %c8_i32_8 = arith.constant 8 : i32
    %17 = arith.addi %16, %c8_i32_8 : i32
    %18 = arith.index_cast %17 : i32 to index
    %19 = memref.load %arg3[%18] : memref<65xi32, #tpu.memory_space<smem>>
    %20 = arith.subi %19, %14 : i32
    %c0_i32_9 = arith.constant 0 : i32
    %21 = arith.addi %10, %c0_i32_9 : i32
    %c8_i32_10 = arith.constant 8 : i32
    %22 = arith.muli %21, %c8_i32_10 : i32
    %c0_i32_11 = arith.constant 0 : i32
    %23 = arith.addi %22, %c0_i32_11 : i32
    %24 = arith.index_cast %23 : i32 to index
    %25 = memref.load %arg3[%24] : memref<65xi32, #tpu.memory_space<smem>>
    %26 = arith.subi %25, %14 : i32
    %c0_i32_12 = arith.constant 0 : i32
    %27 = arith.addi %10, %c0_i32_12 : i32
    %c8_i32_13 = arith.constant 8 : i32
    %28 = arith.muli %27, %c8_i32_13 : i32
    %c1_i32_14 = arith.constant 1 : i32
    %29 = arith.addi %28, %c1_i32_14 : i32
    %30 = arith.index_cast %29 : i32 to index
    %31 = memref.load %arg3[%30] : memref<65xi32, #tpu.memory_space<smem>>
    %32 = arith.subi %31, %14 : i32
    %c0_i32_15 = arith.constant 0 : i32
    %33 = arith.addi %10, %c0_i32_15 : i32
    %c8_i32_16 = arith.constant 8 : i32
    %34 = arith.muli %33, %c8_i32_16 : i32
    %c2_i32_17 = arith.constant 2 : i32
    %35 = arith.addi %34, %c2_i32_17 : i32
    %36 = arith.index_cast %35 : i32 to index
    %37 = memref.load %arg3[%36] : memref<65xi32, #tpu.memory_space<smem>>
    %38 = arith.subi %37, %14 : i32
    %c0_i32_18 = arith.constant 0 : i32
    %39 = arith.addi %10, %c0_i32_18 : i32
    %c8_i32_19 = arith.constant 8 : i32
    %40 = arith.muli %39, %c8_i32_19 : i32
    %c3_i32 = arith.constant 3 : i32
    %41 = arith.addi %40, %c3_i32 : i32
    %42 = arith.index_cast %41 : i32 to index
    %43 = memref.load %arg3[%42] : memref<65xi32, #tpu.memory_space<smem>>
    %44 = arith.subi %43, %14 : i32
    %c0_i32_20 = arith.constant 0 : i32
    %45 = arith.addi %10, %c0_i32_20 : i32
    %c8_i32_21 = arith.constant 8 : i32
    %46 = arith.muli %45, %c8_i32_21 : i32
    %c4_i32 = arith.constant 4 : i32
    %47 = arith.addi %46, %c4_i32 : i32
    %48 = arith.index_cast %47 : i32 to index
    %49 = memref.load %arg3[%48] : memref<65xi32, #tpu.memory_space<smem>>
    %50 = arith.subi %49, %14 : i32
    %c0_i32_22 = arith.constant 0 : i32
    %51 = arith.addi %10, %c0_i32_22 : i32
    %c8_i32_23 = arith.constant 8 : i32
    %52 = arith.muli %51, %c8_i32_23 : i32
    %c5_i32 = arith.constant 5 : i32
    %53 = arith.addi %52, %c5_i32 : i32
    %54 = arith.index_cast %53 : i32 to index
    %55 = memref.load %arg3[%54] : memref<65xi32, #tpu.memory_space<smem>>
    %56 = arith.subi %55, %14 : i32
    %c0_i32_24 = arith.constant 0 : i32
    %57 = arith.addi %10, %c0_i32_24 : i32
    %c8_i32_25 = arith.constant 8 : i32
    %58 = arith.muli %57, %c8_i32_25 : i32
    %c6_i32 = arith.constant 6 : i32
    %59 = arith.addi %58, %c6_i32 : i32
    %60 = arith.index_cast %59 : i32 to index
    %61 = memref.load %arg3[%60] : memref<65xi32, #tpu.memory_space<smem>>
    %62 = arith.subi %61, %14 : i32
    %c0_i32_26 = arith.constant 0 : i32
    %63 = arith.addi %10, %c0_i32_26 : i32
    %c8_i32_27 = arith.constant 8 : i32
    %64 = arith.muli %63, %c8_i32_27 : i32
    %c7_i32 = arith.constant 7 : i32
    %65 = arith.addi %64, %c7_i32 : i32
    %66 = arith.index_cast %65 : i32 to index
    %67 = memref.load %arg3[%66] : memref<65xi32, #tpu.memory_space<smem>>
    %68 = arith.subi %67, %14 : i32
    %c1_i32_28 = arith.constant 1 : i32
    %69 = arith.addi %10, %c1_i32_28 : i32
    %c8_i32_29 = arith.constant 8 : i32
    %70 = arith.muli %69, %c8_i32_29 : i32
    %71 = arith.index_cast %70 : i32 to index
    %72 = memref.load %arg3[%71] : memref<65xi32, #tpu.memory_space<smem>>
    %c1_i32_30 = arith.constant 1 : i32
    %73 = arith.addi %10, %c1_i32_30 : i32
    %c8_i32_31 = arith.constant 8 : i32
    %74 = arith.muli %73, %c8_i32_31 : i32
    %c8_i32_32 = arith.constant 8 : i32
    %75 = arith.addi %74, %c8_i32_32 : i32
    %76 = arith.index_cast %75 : i32 to index
    %77 = memref.load %arg3[%76] : memref<65xi32, #tpu.memory_space<smem>>
    %78 = arith.subi %77, %72 : i32
    %c1_i32_33 = arith.constant 1 : i32
    %79 = arith.addi %10, %c1_i32_33 : i32
    %c8_i32_34 = arith.constant 8 : i32
    %80 = arith.muli %79, %c8_i32_34 : i32
    %c0_i32_35 = arith.constant 0 : i32
    %81 = arith.addi %80, %c0_i32_35 : i32
    %82 = arith.index_cast %81 : i32 to index
    %83 = memref.load %arg3[%82] : memref<65xi32, #tpu.memory_space<smem>>
    %84 = arith.subi %83, %72 : i32
    %c1_i32_36 = arith.constant 1 : i32
    %85 = arith.addi %10, %c1_i32_36 : i32
    %c8_i32_37 = arith.constant 8 : i32
    %86 = arith.muli %85, %c8_i32_37 : i32
    %c1_i32_38 = arith.constant 1 : i32
    %87 = arith.addi %86, %c1_i32_38 : i32
    %88 = arith.index_cast %87 : i32 to index
    %89 = memref.load %arg3[%88] : memref<65xi32, #tpu.memory_space<smem>>
    %90 = arith.subi %89, %72 : i32
    %c1_i32_39 = arith.constant 1 : i32
    %91 = arith.addi %10, %c1_i32_39 : i32
    %c8_i32_40 = arith.constant 8 : i32
    %92 = arith.muli %91, %c8_i32_40 : i32
    %c2_i32_41 = arith.constant 2 : i32
    %93 = arith.addi %92, %c2_i32_41 : i32
    %94 = arith.index_cast %93 : i32 to index
    %95 = memref.load %arg3[%94] : memref<65xi32, #tpu.memory_space<smem>>
    %96 = arith.subi %95, %72 : i32
    %c1_i32_42 = arith.constant 1 : i32
    %97 = arith.addi %10, %c1_i32_42 : i32
    %c8_i32_43 = arith.constant 8 : i32
    %98 = arith.muli %97, %c8_i32_43 : i32
    %c3_i32_44 = arith.constant 3 : i32
    %99 = arith.addi %98, %c3_i32_44 : i32
    %100 = arith.index_cast %99 : i32 to index
    %101 = memref.load %arg3[%100] : memref<65xi32, #tpu.memory_space<smem>>
    %102 = arith.subi %101, %72 : i32
    %c1_i32_45 = arith.constant 1 : i32
    %103 = arith.addi %10, %c1_i32_45 : i32
    %c8_i32_46 = arith.constant 8 : i32
    %104 = arith.muli %103, %c8_i32_46 : i32
    %c4_i32_47 = arith.constant 4 : i32
    %105 = arith.addi %104, %c4_i32_47 : i32
    %106 = arith.index_cast %105 : i32 to index
    %107 = memref.load %arg3[%106] : memref<65xi32, #tpu.memory_space<smem>>
    %108 = arith.subi %107, %72 : i32
    %c1_i32_48 = arith.constant 1 : i32
    %109 = arith.addi %10, %c1_i32_48 : i32
    %c8_i32_49 = arith.constant 8 : i32
    %110 = arith.muli %109, %c8_i32_49 : i32
    %c5_i32_50 = arith.constant 5 : i32
    %111 = arith.addi %110, %c5_i32_50 : i32
    %112 = arith.index_cast %111 : i32 to index
    %113 = memref.load %arg3[%112] : memref<65xi32, #tpu.memory_space<smem>>
    %114 = arith.subi %113, %72 : i32
    %c1_i32_51 = arith.constant 1 : i32
    %115 = arith.addi %10, %c1_i32_51 : i32
    %c8_i32_52 = arith.constant 8 : i32
    %116 = arith.muli %115, %c8_i32_52 : i32
    %c6_i32_53 = arith.constant 6 : i32
    %117 = arith.addi %116, %c6_i32_53 : i32
    %118 = arith.index_cast %117 : i32 to index
    %119 = memref.load %arg3[%118] : memref<65xi32, #tpu.memory_space<smem>>
    %120 = arith.subi %119, %72 : i32
    %c1_i32_54 = arith.constant 1 : i32
    %121 = arith.addi %10, %c1_i32_54 : i32
    %c8_i32_55 = arith.constant 8 : i32
    %122 = arith.muli %121, %c8_i32_55 : i32
    %c7_i32_56 = arith.constant 7 : i32
    %123 = arith.addi %122, %c7_i32_56 : i32
    %124 = arith.index_cast %123 : i32 to index
    %125 = memref.load %arg3[%124] : memref<65xi32, #tpu.memory_space<smem>>
    %126 = arith.subi %125, %72 : i32
    %c2_i32_57 = arith.constant 2 : i32
    %127 = arith.addi %10, %c2_i32_57 : i32
    %c8_i32_58 = arith.constant 8 : i32
    %128 = arith.muli %127, %c8_i32_58 : i32
    %129 = arith.index_cast %128 : i32 to index
    %130 = memref.load %arg3[%129] : memref<65xi32, #tpu.memory_space<smem>>
    %c8_i32_59 = arith.constant 8 : i32
    %131 = arith.muli %10, %c8_i32_59 : i32
    %132 = arith.index_cast %131 : i32 to index
    %133 = memref.load %arg3[%132] : memref<65xi32, #tpu.memory_space<smem>>
    %134 = arith.subi %130, %133 : i32
    %c0_i32_60 = arith.constant 0 : i32
    %135 = arith.subi %134, %c0_i32_60 : i32
    %c1_i32_61 = arith.constant 1 : i32
    %c1_i32_62 = arith.constant 1 : i32
    %136 = arith.subi %c1_i32_61, %c1_i32_62 : i32
    %137 = arith.addi %135, %136 : i32
    %c1_i32_63 = arith.constant 1 : i32
    %138 = arith.divsi %137, %c1_i32_63 : i32
    %c1_i32_64 = arith.constant 1 : i32
    %c0_i32_65 = arith.constant 0 : i32
    %c0_i32_66 = arith.constant 0 : i32
    %139 = arith.subi %138, %c0_i32_66 : i32
    %140 = arith.addi %c0_i32_66, %139 : i32
    %c1_i32_67 = arith.constant 1 : i32
    scf.for %arg8 = %c0_i32_66 to %140 step %c1_i32_67  : i32 {
      %251 = arith.muli %arg8, %c1_i32_64 : i32
      %252 = arith.addi %c0_i32_65, %251 : i32
      %c0_i32_98 = arith.constant 0 : i32
      %c0_i32_99 = arith.constant 0 : i32
      %253 = tpu.memref_slice %arg4[%c0_i32_98, %c0_i32_99] : memref<160x128xf32, #tpu.memory_space<any>> -> memref<1x128xf32, #tpu.memory_space<any>>
      %c0_i32_100 = arith.constant 0 : i32
      %c0_i32_101 = arith.constant 0 : i32
      %254 = tpu.memref_slice %arg6[%c0_i32_100, %c0_i32_101] : memref<96x128xf32, #tpu.memory_space<vmem>> -> memref<1x128xf32, #tpu.memory_space<vmem>>
      %255 = tpu.memref_slice %arg7[%2] : memref<2x!tpu.dma_semaphore, #tpu.memory_space<semaphore_mem>> -> memref<1x!tpu.dma_semaphore, #tpu.memory_space<semaphore_mem>>
      %256 = tpu.memref_squeeze %255 : memref<1x!tpu.dma_semaphore, #tpu.memory_space<semaphore_mem>> -> memref<!tpu.dma_semaphore, #tpu.memory_space<semaphore_mem>>
      tpu.wait_dma2 semaphore(%256 : memref<!tpu.dma_semaphore, #tpu.memory_space<semaphore_mem>>) src(%253 : memref<1x128xf32, #tpu.memory_space<any>>) dst(%254 : memref<1x128xf32, #tpu.memory_space<vmem>>)
    }
    %141 = tpu.iota {dimensions = array<i32: 1>} : vector<1x24xi32>
    %142 = tpu.iota {dimensions = array<i32: 0>} : vector<8x24xi32>
    %c-1_i32 = arith.constant -1 : i32
    %143 = vector.broadcast %c-1_i32 : i32 to vector<1x24xi32>
    %144 = vector.broadcast %26 : i32 to vector<1x24xi32>
    %145 = arith.cmpi sge, %141, %144 : vector<1x24xi32>
    %c0_i32_68 = arith.constant 0 : i32
    %146 = vector.broadcast %c0_i32_68 : i32 to vector<1x24xi32>
    %147 = arith.select %145, %146, %143 : vector<1x24xi1>, vector<1x24xi32>
    %148 = vector.broadcast %32 : i32 to vector<1x24xi32>
    %149 = arith.cmpi sge, %141, %148 : vector<1x24xi32>
    %c1_i32_69 = arith.constant 1 : i32
    %150 = vector.broadcast %c1_i32_69 : i32 to vector<1x24xi32>
    %151 = arith.select %149, %150, %147 : vector<1x24xi1>, vector<1x24xi32>
    %152 = vector.broadcast %38 : i32 to vector<1x24xi32>
    %153 = arith.cmpi sge, %141, %152 : vector<1x24xi32>
    %c2_i32_70 = arith.constant 2 : i32
    %154 = vector.broadcast %c2_i32_70 : i32 to vector<1x24xi32>
    %155 = arith.select %153, %154, %151 : vector<1x24xi1>, vector<1x24xi32>
    %156 = vector.broadcast %44 : i32 to vector<1x24xi32>
    %157 = arith.cmpi sge, %141, %156 : vector<1x24xi32>
    %c3_i32_71 = arith.constant 3 : i32
    %158 = vector.broadcast %c3_i32_71 : i32 to vector<1x24xi32>
    %159 = arith.select %157, %158, %155 : vector<1x24xi1>, vector<1x24xi32>
    %160 = vector.broadcast %50 : i32 to vector<1x24xi32>
    %161 = arith.cmpi sge, %141, %160 : vector<1x24xi32>
    %c4_i32_72 = arith.constant 4 : i32
    %162 = vector.broadcast %c4_i32_72 : i32 to vector<1x24xi32>
    %163 = arith.select %161, %162, %159 : vector<1x24xi1>, vector<1x24xi32>
    %164 = vector.broadcast %56 : i32 to vector<1x24xi32>
    %165 = arith.cmpi sge, %141, %164 : vector<1x24xi32>
    %c5_i32_73 = arith.constant 5 : i32
    %166 = vector.broadcast %c5_i32_73 : i32 to vector<1x24xi32>
    %167 = arith.select %165, %166, %163 : vector<1x24xi1>, vector<1x24xi32>
    %168 = vector.broadcast %62 : i32 to vector<1x24xi32>
    %169 = arith.cmpi sge, %141, %168 : vector<1x24xi32>
    %c6_i32_74 = arith.constant 6 : i32
    %170 = vector.broadcast %c6_i32_74 : i32 to vector<1x24xi32>
    %171 = arith.select %169, %170, %167 : vector<1x24xi1>, vector<1x24xi32>
    %172 = vector.broadcast %68 : i32 to vector<1x24xi32>
    %173 = arith.cmpi sge, %141, %172 : vector<1x24xi32>
    %c7_i32_75 = arith.constant 7 : i32
    %174 = vector.broadcast %c7_i32_75 : i32 to vector<1x24xi32>
    %175 = arith.select %173, %174, %171 : vector<1x24xi1>, vector<1x24xi32>
    %176 = vector.broadcast %20 : i32 to vector<1x24xi32>
    %177 = arith.cmpi slt, %141, %176 : vector<1x24xi32>
    %c-1_i32_76 = arith.constant -1 : i32
    %178 = vector.broadcast %c-1_i32_76 : i32 to vector<1x24xi32>
    %179 = arith.select %177, %175, %178 : vector<1x24xi1>, vector<1x24xi32>
    %180 = vector.broadcast %179 : vector<1x24xi32> to vector<8x24xi32>
    %181 = arith.cmpi eq, %142, %180 : vector<8x24xi32>
    %182 = arith.extui %181 : vector<8x24xi1> to vector<8x24xi32>
    %183 = arith.sitofp %182 : vector<8x24xi32> to vector<8x24xf32>
    %cst = arith.constant dense<0.000000e+00> : vector<8xf32>
    %184 = vector.multi_reduction <add>, %183, %cst [1] : vector<8x24xf32> to vector<8xf32>
    %185 = vector.shape_cast %184 : vector<8xf32> to vector<8x1xf32>
    %c48_i32 = arith.constant 48 : i32
    %186 = arith.muli %2, %c48_i32 : i32
    %c0_i32_77 = arith.constant 0 : i32
    %187 = arith.addi %186, %c0_i32_77 : i32
    %188 = tpu.assume_multiple %187, 8 : i32
    %189 = arith.index_cast %188 : i32 to index
    %c0 = arith.constant 0 : index
    %190 = vector.load %arg6[%189, %c0] : memref<96x128xf32, #tpu.memory_space<vmem>>, vector<24x128xf32>
    %cst_78 = arith.constant dense<0.000000e+00> : vector<8x128xf32>
    %191 = tpu.matmul %183, %190, %cst_78 {dimension_numbers = #tpu.dot_dimension_numbers<[1], [0], [0], [1], [0, 0, 1, 1], [], []>, precision = #tpu.contract_precision<fp32>} : vector<8x24xf32>, vector<24x128xf32>, vector<8x128xf32> -> vector<8x128xf32>
    %cst_79 = arith.constant 1.000000e+00 : f32
    %192 = vector.broadcast %cst_79 : f32 to vector<8x1xf32>
    %193 = arith.maximumf %185, %192 : vector<8x1xf32>
    %194 = vector.broadcast %193 : vector<8x1xf32> to vector<8x128xf32>
    %195 = arith.divf %191, %194 : vector<8x128xf32>
    %c0_80 = arith.constant 0 : index
    %c0_81 = arith.constant 0 : index
    %196 = vector.load %arg5[%c0_80, %c0_81] : memref<8x256xf32, #tpu.memory_space<vmem>>, vector<8x128xf32>
    tpu.vector_store %arg5[%c0_80, %c0_81], %195 {strides = array<i32>} : memref<8x256xf32, #tpu.memory_space<vmem>>, vector<8x128xf32>,
    %c-1_i32_82 = arith.constant -1 : i32
    %197 = vector.broadcast %c-1_i32_82 : i32 to vector<1x24xi32>
    %198 = vector.broadcast %84 : i32 to vector<1x24xi32>
    %199 = arith.cmpi sge, %141, %198 : vector<1x24xi32>
    %c0_i32_83 = arith.constant 0 : i32
    %200 = vector.broadcast %c0_i32_83 : i32 to vector<1x24xi32>
    %201 = arith.select %199, %200, %197 : vector<1x24xi1>, vector<1x24xi32>
    %202 = vector.broadcast %90 : i32 to vector<1x24xi32>
    %203 = arith.cmpi sge, %141, %202 : vector<1x24xi32>
    %c1_i32_84 = arith.constant 1 : i32
    %204 = vector.broadcast %c1_i32_84 : i32 to vector<1x24xi32>
    %205 = arith.select %203, %204, %201 : vector<1x24xi1>, vector<1x24xi32>
    %206 = vector.broadcast %96 : i32 to vector<1x24xi32>
    %207 = arith.cmpi sge, %141, %206 : vector<1x24xi32>
    %c2_i32_85 = arith.constant 2 : i32
    %208 = vector.broadcast %c2_i32_85 : i32 to vector<1x24xi32>
    %209 = arith.select %207, %208, %205 : vector<1x24xi1>, vector<1x24xi32>
    %210 = vector.broadcast %102 : i32 to vector<1x24xi32>
    %211 = arith.cmpi sge, %141, %210 : vector<1x24xi32>
    %c3_i32_86 = arith.constant 3 : i32
    %212 = vector.broadcast %c3_i32_86 : i32 to vector<1x24xi32>
    %213 = arith.select %211, %212, %209 : vector<1x24xi1>, vector<1x24xi32>
    %214 = vector.broadcast %108 : i32 to vector<1x24xi32>
    %215 = arith.cmpi sge, %141, %214 : vector<1x24xi32>
    %c4_i32_87 = arith.constant 4 : i32
    %216 = vector.broadcast %c4_i32_87 : i32 to vector<1x24xi32>
    %217 = arith.select %215, %216, %213 : vector<1x24xi1>, vector<1x24xi32>
    %218 = vector.broadcast %114 : i32 to vector<1x24xi32>
    %219 = arith.cmpi sge, %141, %218 : vector<1x24xi32>
    %c5_i32_88 = arith.constant 5 : i32
    %220 = vector.broadcast %c5_i32_88 : i32 to vector<1x24xi32>
    %221 = arith.select %219, %220, %217 : vector<1x24xi1>, vector<1x24xi32>
    %222 = vector.broadcast %120 : i32 to vector<1x24xi32>
    %223 = arith.cmpi sge, %141, %222 : vector<1x24xi32>
    %c6_i32_89 = arith.constant 6 : i32
    %224 = vector.broadcast %c6_i32_89 : i32 to vector<1x24xi32>
    %225 = arith.select %223, %224, %221 : vector<1x24xi1>, vector<1x24xi32>
    %226 = vector.broadcast %126 : i32 to vector<1x24xi32>
    %227 = arith.cmpi sge, %141, %226 : vector<1x24xi32>
    %c7_i32_90 = arith.constant 7 : i32
    %228 = vector.broadcast %c7_i32_90 : i32 to vector<1x24xi32>
    %229 = arith.select %227, %228, %225 : vector<1x24xi1>, vector<1x24xi32>
    %230 = vector.broadcast %78 : i32 to vector<1x24xi32>
    %231 = arith.cmpi slt, %141, %230 : vector<1x24xi32>
    %c-1_i32_91 = arith.constant -1 : i32
    %232 = vector.broadcast %c-1_i32_91 : i32 to vector<1x24xi32>
    %233 = arith.select %231, %229, %232 : vector<1x24xi1>, vector<1x24xi32>
    %234 = vector.broadcast %233 : vector<1x24xi32> to vector<8x24xi32>
    %235 = arith.cmpi eq, %142, %234 : vector<8x24xi32>
    %236 = arith.extui %235 : vector<8x24xi1> to vector<8x24xi32>
    %237 = arith.sitofp %236 : vector<8x24xi32> to vector<8x24xf32>
    %cst_92 = arith.constant dense<0.000000e+00> : vector<8xf32>
    %238 = vector.multi_reduction <add>, %237, %cst_92 [1] : vector<8x24xf32> to vector<8xf32>
    %239 = vector.shape_cast %238 : vector<8xf32> to vector<8x1xf32>
    %c48_i32_93 = arith.constant 48 : i32
    %240 = arith.muli %2, %c48_i32_93 : i32
    %c24_i32 = arith.constant 24 : i32
    %241 = arith.addi %240, %c24_i32 : i32
    %242 = tpu.assume_multiple %241, 8 : i32
    %243 = arith.index_cast %242 : i32 to index
    %c0_94 = arith.constant 0 : index
    %244 = vector.load %arg6[%243, %c0_94] : memref<96x128xf32, #tpu.memory_space<vmem>>, vector<24x128xf32>
    %cst_95 = arith.constant dense<0.000000e+00> : vector<8x128xf32>
    %245 = tpu.matmul %237, %244, %cst_95 {dimension_numbers = #tpu.dot_dimension_numbers<[1], [0], [0], [1], [0, 0, 1, 1], [], []>, precision = #tpu.contract_precision<fp32>} : vector<8x24xf32>, vector<24x128xf32>, vector<8x128xf32> -> vector<8x128xf32>
    %cst_96 = arith.constant 1.000000e+00 : f32
    %246 = vector.broadcast %cst_96 : f32 to vector<8x1xf32>
    %247 = arith.maximumf %239, %246 : vector<8x1xf32>
    %248 = vector.broadcast %247 : vector<8x1xf32> to vector<8x128xf32>
    %249 = arith.divf %245, %248 : vector<8x128xf32>
    %c0_97 = arith.constant 0 : index
    %c128 = arith.constant 128 : index
    %250 = vector.load %arg5[%c0_97, %c128] : memref<8x256xf32, #tpu.memory_space<vmem>>, vector<8x128xf32>
    tpu.vector_store %arg5[%c0_97, %c128], %249 {strides = array<i32>} : memref<8x256xf32, #tpu.memory_space<vmem>>, vector<8x128xf32>,
    return
  }
  func.func @transform_1(%arg0: i32, %arg1: i32, %arg2: memref<114xi32, #tpu.memory_space<smem>>, %arg3: memref<65xi32, #tpu.memory_space<smem>>) -> (i32, i32) {
    %c2_i32 = arith.constant 2 : i32
    %0 = arith.muli %arg0, %c2_i32 : i32
    %1 = arith.addi %0, %arg1 : i32
    %c0_i32 = arith.constant 0 : i32
    %c0_i32_0 = arith.constant 0 : i32
    return %c0_i32, %1 : i32, i32
  }
}

</mosaic_0001>

<bundles_post_ra>
// kernel: parallel_tablewise_embedding_bag.1
= control target key start
LH: loop header
LB: loop body
LE: loop exit
PB: predicated region body
PF: predicated region fallthrough
CT: control target
= control target key end

     0   :  { %s2701_s0 = inlined_call_operand.vmem [shape: s32[114], index: 0, kind: input, shape index: {}]   ;;  %s2702_s2 = inlined_call_operand.hbm [shape: f32[160,128], index: 2, kind: input, shape index: {}]   ;;  %s2703_s3 = inlined_call_operand.hbm [shape: f32[8,1024], index: 3, kind: output, shape index: {}]   ;;  %s2704_s1 = inlined_call_operand.vmem [shape: s32[65], index: 1, kind: input, shape index: {}]  }
   0x1   :  { %2723 = sst [smem:[#allocation36_spill]] %s2702_s2  ;;  %s8_s14 = sshll.u32 %s2701_s0, 4  ;;  %s9_s14 = int_to_ptr.vmem [resolvable:$true] %s8_s14 }
   0x2   :  { %2724 = sst [smem:[#allocation37_spill]] %s2703_s3  ;;  %s12_s17 = sshll.u32 %s2704_s1, 4  ;;  %s13_s17 = int_to_ptr.vmem [resolvable:$true] %s12_s17 }
   0x3   :  { %s1832_s18 = scalar_lea.vmem %s9_s14, 16  ;;  %p1837_p1 = scmp.lt.s32.totalorder %s9_s14, %s9_s14 }
   0x4   :  { %p1833_p0 = scmp.ne.s32.totalorder %s9_s14, %s1832_s18  ;;  %p1838_p2 = scmp.lt.s32.totalorder %s1832_s18, %s1832_s18 }
   0x6   :  { %p1839_p3 = por %p1838_p2, %p1837_p1 }
   0x8   :  { %p1840_p4 = pnand %p1839_p3, %p1833_p0 }
   0xa   :  { %1843 = shalt.err (!%p1840_p4)  }
   0xb   :  { %s2068_s19 = smov [#allocation5]   ;;  %s1844_s20 = scalar_lea.vmem %s13_s17, 16 }
   0xc   :  { %11 = dma.vmem_to_smem %s9_s14, 16, %s2068_s19, [#allocation4] }
   0xd   :  { %p1845_p5 = scmp.ne.s32.totalorder %s13_s17, %s1844_s20  ;;  %p1849_p6 = scmp.lt.s32.totalorder %s13_s17, %s13_s17 }
   0xe   :  { %p1850_p7 = scmp.lt.s32.totalorder %s1844_s20, %s1844_s20 }
  0x10   :  { %p1851_p8 = por %p1850_p7, %p1849_p6 }
  0x12   :  { %p1852_p9 = pnand %p1851_p8, %p1845_p5 }
  0x14   :  { %1855 = shalt.err (!%p1852_p9)  }
  0x15   :  { %s2069_s0 = smov [#allocation6]  }
  0x16   :  { %15 = dma.vmem_to_smem %s13_s17, 16, %s2069_s0, [#allocation4] }
  0x17   :  { %2020 = dma.done.wait [#allocation4], 32 }
  0x18   :  { %2021 = vsyncadd [#allocation4], 4294967264 }
  0x19   :  { %17 = sfence }
  0x1a   :  { %18 = vsyncpa [#allocation8], 0 }
  0x1b   :  { %20 = vsyncpa [#allocation8 + $0x1], 0  ;;  %s2106_s1 = smov 0   ;;  %s2108_s21 = smov 0  }
  0x1c   :  { %s2110_s22 = smov 0   ;;  %s2112_s23 = smov 0  }
  0x1d   :  { %s2114_s24 = smov 0  }
  0x1e LB: > { %2725 = sst [smem:[#allocation22_spill]] %s2030_s1  ;;  %s32_s25 = sadd.s32 1, %s2038_s22  ;;  %s2046_s24 = sphi %s2114_s24, %s26_s24   ;;  %s2042_s23 = sphi %s2112_s23, %s2774_s23   ;;  %s2038_s22 = sphi %s2110_s22, %s2773_s22   ;;  %s2034_s21 = sphi %s2108_s21, %s2772_s21   ;;  %s2030_s1 = sphi %s2106_s1, %s2771_s1  }
  0x1f   : > { %2726 = sst [smem:[#allocation23_spill]] %s2034_s21  ;;  %p2132_p10 = scmp.ge.s32.totalorder %s32_s25, 2 }
  0x20   : > { %2727 = sst [smem:[#allocation24_spill]] %s2046_s24  ;;  %s35_s27 = sadd.s32 1, %s2042_s23 }
  0x21   : > { %s1456_s28 = sadd.s32 4294967295, %s2046_s24   ;;  %s1457_s29 = sshll.u32 %s2042_s23, 1 }
  0x22   : > { %s2776_s27 = smov (!%p2132_p10, %s35_s27), %s2042_s23  ;;  %s2778_s25 = smov (%p2132_p10, %s32_s25), 0 }
  0x23   : > { %2729 = sst [smem:[#allocation25_spill]] %s2778_s25  ;;  %p37_p11 = scmp.ge.s32.totalorder %s2776_s27, 2 }
  0x24   : > { %p55_p12 = scmp.ne.s32.totalorder %s2034_s21, %s2030_s1  ;;  %p56_p13 = scmp.eq.s32.totalorder %s1456_s28, 3 }
  0x25   : > { %s2780_s27 = smov (%p37_p11, %s2776_s27), 0  ;;  %s2151_s30 = sadd.s32 %s2038_s22, %s1457_s29 }
  0x26   : > { %2730 = sst [smem:[#allocation26_spill]] %s2780_s27  ;;  %p2153_p0 = por %p56_p13, %p55_p12 }
  0x27   : > { %2731 = sst [smem:[#allocation27_spill]] %s2151_s30  ;;  %s1458_s5 = sshll.u32 %s2780_s27, 1 }
  0x28   : > { %s2732_s4 = scalar_select %p2153_p0, 1, 0 }
  0x29   : > { %s42_s6 = sadd.s32 %s1458_s5, %s2778_s25  ;;  %s46_s7 = sadd.s32 1, %s2034_s21 }
  0x2a   : > { %2733 = sst [smem:[#allocation28_spill]] %s2732_s4  ;;  %s43_s8 = ssub.s32 %s2151_s30, %s42_s6 }
  0x2b   : > { %p50_p1 = scmp.eq.s32.totalorder %s2046_s24, 3  ;;  %p44_p2 = scmp.eq.s32.totalorder %s43_s8, 0 }
  0x2c   : > { %p1459_p3 = scmp.ne.s32.totalorder %s43_s8, 0  ;;  %p1460_p5 = scmp.ge.s32.totalorder %s2046_s24, 4 }
  0x2d   : > { %s2163_s9 = scalar_select %p44_p2, %s2034_s21, %s46_s7  }
  0x2e   : > { %p2165_p4 = por %p1459_p3, %p50_p1  ;;  %65 = sbr.rel (%p1460_p5) target bundleno = 657 (0x291), region = 12 }
  0x2f   : > { %2734 = sst [smem:[#allocation29_spill]] %s2163_s9 }
  0x30   : > { %s2735_s10 = scalar_select %p2165_p4, 1, 0 }
  0x32   : > { %2736 = sst [smem:[#allocation30_spill]] %s2735_s10 }
  0x35   : > { %s2705_s11 = sand.u32 1, %s2034_s21   ;;  %s2172_s12 = sand.u32 1, %s2038_s22 }
  0x36   : > { %s1461_s13 = sshll.u32 %s2705_s11, 4  ;;  %p1463_p6 = scmp.ne.s32.totalorder %s2038_s22, 0 }
  0x37   : > { %s2176_s14 = scalar_lea.vmem [#allocation7], %s1461_s13  ;;  %s1464_s15 = sshll.u32 (!%p1463_p6), %s2042_s23, 5  ;;  %v2070_v0 = vmov (!%p1463_p6), 0.0  }
  0x38   : > { %2737 = sst [smem:[#allocation31_spill]] %s2176_s14  ;;  %82 = sbr.rel (%p1463_p6) target bundleno = 171 (0xab), region = 16  ;;  %83 = vst [vmem:[#allocation2] sm:$0xff] (!%p1463_p6), %v2070_v0  ;;  %84 = vst [vmem:[#allocation2 + $0x8] sm:$0xff] (!%p1463_p6), %v2070_v0 }
  0x39   : > { %85 = vst [vmem:[#allocation2 + $0x10] sm:$0xff] (!%p1463_p6), %v2070_v0  ;;  %86 = vst [vmem:[#allocation2 + $0x18] sm:$0xff] (!%p1463_p6), %v2070_v0  ;;  %s2180_s16 = sld [smem:[#allocation6 + %s1464_s15]] (!%p1463_p6)  ;;  %s2182_s17 = sadd.s32 (!%p1463_p6), 8, %s1464_s15 }
  0x3a   : > { %87 = vst [vmem:[#allocation2 + $0x20] sm:$0xff] (!%p1463_p6), %v2070_v0  ;;  %88 = vst [vmem:[#allocation2 + $0x28] sm:$0xff] (!%p1463_p6), %v2070_v0  ;;  %s98_s18 = sld [smem:[#allocation6 + %s2182_s17]] (!%p1463_p6) }
  0x3b   : > { %89 = vst [vmem:[#allocation2 + $0x30] sm:$0xff] (!%p1463_p6), %v2070_v0  ;;  %90 = vst [vmem:[#allocation2 + $0x38] sm:$0xff] (!%p1463_p6), %v2070_v0 }
  0x3c   : > { %91 = vst [vmem:[#allocation2 + $0x40] sm:$0xff] (!%p1463_p6), %v2070_v0  ;;  %92 = vst [vmem:[#allocation2 + $0x48] sm:$0xff] (!%p1463_p6), %v2070_v0 }
  0x3d   : > { %93 = vst [vmem:[#allocation2 + $0x50] sm:$0xff] (!%p1463_p6), %v2070_v0  ;;  %94 = vst [vmem:[#allocation2 + $0x58] sm:$0xff] (!%p1463_p6), %v2070_v0 }
  0x40   : > { %s2186_s19 = ssub.s32 %s98_s18, %s2180_s16 }
  0x41   : > { %p1465_p7 = scmp.le.s32.totalorder %s2186_s19, 0 }
  0x42   : > { %s2189_s20 = smov (!%p1465_p7), 0  }
  0x43   : > { %1416 = sbr.rel (%p1465_p7) target bundleno = 114 (0x72), region = 111 }
  0x4a LB: >> { %s106_s0 = sadd.s32 %s2050_s20, %s2180_s16  ;;  %s110_s23 = scalar_lea.vmem [#allocation2], %s2050_s20  ;;  %s2050_s20 = sphi %s2189_s20, %s103_s20  }
  0x4b   : >> { %s107_s22 = sld [smem:[#allocation5 + %s106_s0]]  ;;  %s118_s28 = sshll.u32 %s110_s23, 4  ;;  %s119_s28 = int_to_ptr.vmem [resolvable:$true] %s118_s28 }
  0x4c   : >> { %s2738_s2 = sld [smem:[#allocation36_spill]] }
  0x51   : >> { %s1466_s29 = sshll.u32 %s107_s22, 4 }
  0x52   : >> { %s109_s7 = scalar_lea.hbm %s2738_s2, %s1466_s29  ;;  %s1858_s18 = scalar_lea.hbm %s2738_s2, 2560 }
  0x53   : >> { %s1856_s8 = scalar_lea.hbm %s109_s7, 16  ;;  %p1859_p9 = scmp.lt.u32.totalorder %s109_s7, %s2738_s2 }
  0x54   : >> { %p1857_p8 = scmp.ne.s32.totalorder %s109_s7, %s1856_s8  ;;  %p1860_p11 = scmp.lt.u32.totalorder %s1858_s18, %s1856_s8 }
  0x55   : >> { %p1862_p13 = scmp.lt.u32.totalorder %s1856_s8, %s109_s7 }
  0x56   : >> { %p1861_p12 = por %p1860_p11, %p1859_p9 }
  0x58   : >> { %p1863_p1 = por %p1862_p13, %p1861_p12 }
  0x5a   : >> { %p1864_p2 = pnand %p1863_p1, %p1857_p8 }
  0x5c   : >> { %1867 = shalt.err (!%p1864_p2)  }
  0x5d   : >> { %s1868_s0 = scalar_lea.vmem %s119_s28, 16  ;;  %s2071_s22 = smov [#allocation2]  }
  0x5e   : >> { %p1869_p3 = scmp.ne.s32.totalorder %s119_s28, %s1868_s0  ;;  %s1870_s23 = sshll.u32 %s2071_s22, 4  ;;  %s1871_s23 = int_to_ptr.vmem [resolvable:$false] %s1870_s23 }
  0x5f   : >> { %s1872_s29 = scalar_lea.vmem %s1871_s23, 1536  ;;  %p1873_p5 = scmp.lt.s32.totalorder %s119_s28, %s1871_s23 }
  0x60   : >> { %p1874_p6 = scmp.lt.s32.totalorder %s1872_s29, %s1868_s0 }
  0x62   : >> { %p1875_p7 = por %p1874_p6, %p1873_p5 }
  0x64   : >> { %p1876_p0 = pnand %p1875_p7, %p1869_p3 }
  0x66   : >> { %1879 = shalt.err (!%p1876_p0)  }
  0x67   : >> { %121 = dma.hbm_to_vmem [thread:$0]  %s109_s7, 16, %s119_s28, [#allocation3] }
  0x68   : >> { %s103_s20 = sadd.s32 1, %s2050_s20  }
  0x69   : >> { %p102_p9 = scmp.ge.s32.totalorder %s103_s20, %s2186_s19 }
  0x6b   : > { %105 = sbr.rel (!%p102_p9) target bundleno = 74 (0x4a), region = 117 }
  0x72 PF: > { %s2211_s27 = sld [smem:[#allocation6 + %s2182_s17]]  ;;  %s126_s11 = sadd.s32 8, %s2182_s17 }
  0x73   : > { %s127_s5 = sld [smem:[#allocation6 + %s126_s11]] }
  0x79   : > { %s2215_s6 = ssub.s32 %s127_s5, %s2211_s27 }
  0x7a   : > { %p1469_p0 = scmp.le.s32.totalorder %s2215_s6, 0 }
  0x7b   : > { %s2218_s28 = smov (!%p1469_p0), 0  }
  0x7c   : > { %1421 = sbr.rel (%p1469_p0) target bundleno = 171 (0xab), region = 122 }
  0x83 LB: >> { %s135_s16 = sadd.s32 %s2054_s28, %s2211_s27  ;;  %s1383_s20 = scalar_lea.vmem [#allocation2], %s2054_s28  ;;  %s2054_s28 = sphi %s2218_s28, %s132_s28  }
  0x84   : >> { %s136_s19 = sld [smem:[#allocation5 + %s135_s16]]  ;;  %s1384_s17 = scalar_lea.vmem %s1383_s20, 24 [#allocation2] }
  0x85   : >> { %s148_s7 = sshll.u32 %s1384_s17, 4  ;;  %s2739_s2 = sld [smem:[#allocation36_spill]]  ;;  %s149_s7 = int_to_ptr.vmem [resolvable:$true] %s148_s7 }
  0x8a   : >> { %s1470_s8 = sshll.u32 %s136_s19, 4 }
  0x8b   : >> { %s139_s18 = scalar_lea.hbm %s2739_s2, %s1470_s8  ;;  %s1882_s29 = scalar_lea.hbm %s2739_s2, 2560 }
  0x8c   : >> { %s1880_s0 = scalar_lea.hbm %s139_s18, 16  ;;  %p1883_p11 = scmp.lt.u32.totalorder %s139_s18, %s2739_s2 }
  0x8d   : >> { %p1881_p8 = scmp.ne.s32.totalorder %s139_s18, %s1880_s0  ;;  %p1884_p12 = scmp.lt.u32.totalorder %s1882_s29, %s1880_s0 }
  0x8e   : >> { %p1886_p1 = scmp.lt.u32.totalorder %s1880_s0, %s139_s18 }
  0x8f   : >> { %p1885_p13 = por %p1884_p12, %p1883_p11 }
  0x91   : >> { %p1887_p2 = por %p1886_p1, %p1885_p13 }
  0x93   : >> { %p1888_p3 = pnand %p1887_p2, %p1881_p8 }
  0x95   : >> { %1891 = shalt.err (!%p1888_p3)  }
  0x96   : >> { %s1892_s16 = scalar_lea.vmem %s149_s7, 16  ;;  %s2072_s19 = smov [#allocation2]  }
  0x97   : >> { %p1893_p5 = scmp.ne.s32.totalorder %s149_s7, %s1892_s16  ;;  %s1894_s20 = sshll.u32 %s2072_s19, 4  ;;  %s1895_s20 = int_to_ptr.vmem [resolvable:$false] %s1894_s20 }
  0x98   : >> { %s1896_s17 = scalar_lea.vmem %s1895_s20, 1536  ;;  %p1897_p6 = scmp.lt.s32.totalorder %s149_s7, %s1895_s20 }
  0x99   : >> { %p1898_p7 = scmp.lt.s32.totalorder %s1896_s17, %s1892_s16 }
  0x9b   : >> { %p1899_p9 = por %p1898_p7, %p1897_p6 }
  0x9d   : >> { %p1900_p0 = pnand %p1899_p9, %p1893_p5 }
  0x9f   : >> { %1903 = shalt.err (!%p1900_p0)  }
  0xa0   : >> { %151 = dma.hbm_to_vmem [thread:$0]  %s139_s18, 16, %s149_s7, [#allocation3] }
  0xa1   : >> { %s132_s28 = sadd.s32 1, %s2054_s28  }
  0xa2   : >> { %p131_p11 = scmp.ge.s32.totalorder %s132_s28, %s2215_s6 }
  0xa4   : > { %134 = sbr.rel (!%p131_p11) target bundleno = 131 (0x83), region = 128 }
  0xab PF: > { %156 = sbr.rel (%p2132_p10) target bundleno = 306 (0x132), region = 42 }
  0xb2   : > { %s2242_s8 = ssub.s32 1, %s2172_s12  ;;  %s1505_s13 = sshll.u32 %s2151_s30, 4 }
  0xb3   : > { %s159_s15 = smul.u32 48, %s2242_s8  ;;  %s1506_s7 = sadd.s32 16, %s1505_s13 }
  0xb4   : > { %s2246_s18 = sld [smem:[#allocation6 + %s1506_s7]]  ;;  %s2248_s0 = sadd.s32 8, %s1506_s7 }
  0xb5   : > { %s163_s28 = sld [smem:[#allocation6 + %s2248_s0]] }
  0xba   : > { %2740 = sst [smem:[#allocation32_spill]] %s2246_s18 }
  0xbb   : > { %s2252_s27 = ssub.s32 %s163_s28, %s2246_s18 }
  0xbc   : > { %p1473_p8 = scmp.le.s32.totalorder %s2252_s27, 0 }
  0xbd   : > { %s2255_s26 = smov (!%p1473_p8), 0  }
  0xbe   : > { %1426 = sbr.rel (%p1473_p8) target bundleno = 243 (0xf3), region = 133 }
  0xc5 LB: >> { %s2741_s18 = sld [smem:[#allocation32_spill]]  ;;  %s173_s22 = sadd.s32 %s2058_s26, %s159_s15  ;;  %s2058_s26 = sphi %s2255_s26, %s168_s26  }
  0xc6   : >> { %s176_s29 = scalar_lea.vmem [#allocation2], %s173_s22  ;;  %s2742_s2 = sld [smem:[#allocation36_spill]] }
  0xc7   : >> { %s185_s11 = sshll.u32 %s176_s29, 4  ;;  %s177_s17 = scalar_lea.sflag [#allocation3], %s2242_s8  ;;  %s186_s11 = int_to_ptr.vmem [resolvable:$true] %s185_s11 }
  0xcb   : >> { %s171_s6 = sadd.s32 %s2058_s26, %s2741_s18 }
  0xcc   : >> { %s172_s23 = sld [smem:[#allocation5 + %s171_s6]]  ;;  %s1906_s25 = scalar_lea.hbm %s2742_s2, 2560 }
  0xd2   : >> { %s1474_s5 = sshll.u32 %s172_s23, 4 }
  0xd3   : >> { %s175_s20 = scalar_lea.hbm %s2742_s2, %s1474_s5 }
  0xd4   : >> { %s1904_s13 = scalar_lea.hbm %s175_s20, 16  ;;  %p1907_p12 = scmp.lt.u32.totalorder %s175_s20, %s2742_s2 }
  0xd5   : >> { %p1905_p10 = scmp.ne.s32.totalorder %s175_s20, %s1904_s13  ;;  %p1908_p13 = scmp.lt.u32.totalorder %s1906_s25, %s1904_s13 }
  0xd6   : >> { %p1910_p2 = scmp.lt.u32.totalorder %s1904_s13, %s175_s20 }
  0xd7   : >> { %p1909_p1 = por %p1908_p13, %p1907_p12 }
  0xd9   : >> { %p1911_p3 = por %p1910_p2, %p1909_p1 }
  0xdb   : >> { %p1912_p5 = pnand %p1911_p3, %p1905_p10 }
  0xdd   : >> { %1915 = shalt.err (!%p1912_p5)  }
  0xde   : >> { %s1916_s6 = scalar_lea.vmem %s186_s11, 16  ;;  %s2073_s22 = smov [#allocation2]  }
  0xdf   : >> { %p1917_p6 = scmp.ne.s32.totalorder %s186_s11, %s1916_s6  ;;  %s1918_s23 = sshll.u32 %s2073_s22, 4  ;;  %s1919_s23 = int_to_ptr.vmem [resolvable:$false] %s1918_s23 }
  0xe0   : >> { %s1920_s29 = scalar_lea.vmem %s1919_s23, 1536  ;;  %p1921_p7 = scmp.lt.s32.totalorder %s186_s11, %s1919_s23 }
  0xe1   : >> { %p1922_p9 = scmp.lt.s32.totalorder %s1920_s29, %s1916_s6 }
  0xe3   : >> { %p1923_p0 = por %p1922_p9, %p1921_p7 }
  0xe5   : >> { %p1924_p11 = pnand %p1923_p0, %p1917_p6 }
  0xe7   : >> { %1927 = shalt.err (!%p1924_p11)  }
  0xe8   : >> { %188 = dma.hbm_to_vmem [thread:$0]  %s175_s20, 16, %s186_s11, %s177_s17 }
  0xe9   : >> { %s168_s26 = sadd.s32 1, %s2058_s26  }
  0xea   : >> { %p167_p8 = scmp.ge.s32.totalorder %s168_s26, %s2252_s27 }
  0xec   : > { %170 = sbr.rel (!%p167_p8) target bundleno = 197 (0xc5), region = 139 }
  0xf3 PF: > { %s2280_s25 = sld [smem:[#allocation6 + %s2248_s0]]  ;;  %s193_s9 = sadd.s32 8, %s2248_s0 }
  0xf4   : > { %s194_s18 = sld [smem:[#allocation6 + %s193_s9]] }
  0xf9   : > { %2743 = sst [smem:[#allocation32_spill]] %s2280_s25 }
  0xfa   : > { %s2284_s5 = ssub.s32 %s194_s18, %s2280_s25 }
  0xfb   : > { %p1477_p10 = scmp.le.s32.totalorder %s2284_s5, 0 }
  0xfc   : > { %s2287_s11 = smov (!%p1477_p10), 0  }
  0xfd   : > { %1431 = sbr.rel (%p1477_p10) target bundleno = 306 (0x132), region = 144 }
 0x104 LB: >> { %s2744_s25 = sld [smem:[#allocation32_spill]]  ;;  %s1394_s0 = sadd.s32 %s2062_s11, %s159_s15  ;;  %s2062_s11 = sphi %s2287_s11, %s200_s11  }
 0x105   : >> { %s1395_s16 = scalar_lea.vmem [#allocation2], %s1394_s0  ;;  %s2745_s2 = sld [smem:[#allocation36_spill]] }
 0x106   : >> { %s1396_s19 = scalar_lea.vmem %s1395_s16, 24 [#allocation2]  ;;  %s209_s6 = scalar_lea.sflag [#allocation3], %s2242_s8 }
 0x107   : >> { %s217_s20 = sshll.u32 %s1396_s19, 4  ;;  %s218_s20 = int_to_ptr.vmem [resolvable:$true] %s217_s20 }
 0x10a   : >> { %s203_s27 = sadd.s32 %s2062_s11, %s2744_s25 }
 0x10b   : >> { %s204_s26 = sld [smem:[#allocation5 + %s203_s27]]  ;;  %s1930_s9 = scalar_lea.hbm %s2745_s2, 2560 }
 0x111   : >> { %s1478_s17 = sshll.u32 %s204_s26, 4 }
 0x112   : >> { %s207_s28 = scalar_lea.hbm %s2745_s2, %s1478_s17 }
 0x113   : >> { %s1928_s22 = scalar_lea.hbm %s207_s28, 16  ;;  %p1931_p13 = scmp.lt.u32.totalorder %s207_s28, %s2745_s2 }
 0x114   : >> { %p1929_p12 = scmp.ne.s32.totalorder %s207_s28, %s1928_s22  ;;  %p1932_p1 = scmp.lt.u32.totalorder %s1930_s9, %s1928_s22 }
 0x115   : >> { %p1934_p3 = scmp.lt.u32.totalorder %s1928_s22, %s207_s28 }
 0x116   : >> { %p1933_p2 = por %p1932_p1, %p1931_p13 }
 0x118   : >> { %p1935_p5 = por %p1934_p3, %p1933_p2 }
 0x11a   : >> { %p1936_p6 = pnand %p1935_p5, %p1929_p12 }
 0x11c   : >> { %1939 = shalt.err (!%p1936_p6)  }
 0x11d   : >> { %s1940_s27 = scalar_lea.vmem %s218_s20, 16  ;;  %s2074_s0 = smov [#allocation2]  }
 0x11e   : >> { %p1941_p7 = scmp.ne.s32.totalorder %s218_s20, %s1940_s27  ;;  %s1942_s26 = sshll.u32 %s2074_s0, 4  ;;  %s1943_s26 = int_to_ptr.vmem [resolvable:$false] %s1942_s26 }
 0x11f   : >> { %s1944_s16 = scalar_lea.vmem %s1943_s26, 1536  ;;  %p1945_p9 = scmp.lt.s32.totalorder %s218_s20, %s1943_s26 }
 0x120   : >> { %p1946_p0 = scmp.lt.s32.totalorder %s1944_s16, %s1940_s27 }
 0x122   : >> { %p1947_p11 = por %p1946_p0, %p1945_p9 }
 0x124   : >> { %p1948_p8 = pnand %p1947_p11, %p1941_p7 }
 0x126   : >> { %1951 = shalt.err (!%p1948_p8)  }
 0x127   : >> { %220 = dma.hbm_to_vmem [thread:$0]  %s207_s28, 16, %s218_s20, %s209_s6 }
 0x128   : >> { %s200_s11 = sadd.s32 1, %s2062_s11  }
 0x129   : >> { %p199_p10 = scmp.ge.s32.totalorder %s200_s11, %s2284_s5 }
 0x12b   : > { %202 = sbr.rel (!%p199_p10) target bundleno = 260 (0x104), region = 150 }
 0x132 PF: > { %s2312_s25 = sshll.u32 %s2151_s30, 4 }
 0x133   : > { %s2315_s19 = sld [smem:[#allocation6 + %s2312_s25]]  ;;  %s2318_s20 = sadd.s32 8, %s2312_s25 }
 0x134   : > { %s2321_s8 = sld [smem:[#allocation6 + %s2318_s20]]  ;;  %s227_s15 = sadd.s32 1, %s2312_s25 }
 0x135   : > { %s2324_s5 = sld [smem:[#allocation6 + %s227_s15]]  ;;  %s230_s11 = sadd.s32 2, %s2312_s25 }
 0x136   : > { %s2327_s17 = sld [smem:[#allocation6 + %s230_s11]]  ;;  %s233_s13 = sadd.s32 3, %s2312_s25 }
 0x137   : > { %s2330_s7 = sld [smem:[#allocation6 + %s233_s13]]  ;;  %s236_s28 = sadd.s32 4, %s2312_s25 }
 0x138   : > { %s2333_s6 = sld [smem:[#allocation6 + %s236_s28]]  ;;  %s239_s22 = sadd.s32 5, %s2312_s25 }
 0x139   : > { %s2336_s23 = sld [smem:[#allocation6 + %s239_s22]]  ;;  %s242_s29 = sadd.s32 6, %s2312_s25 }
 0x13a   : > { %2746 = sst [smem:[#allocation33_spill]] %s2321_s8  ;;  %s245_s0 = sadd.s32 7, %s2312_s25 }
 0x13b   : > { %s2341_s18 = sld [smem:[#allocation6 + %s242_s29]]  ;;  %s251_s28 = sadd.s32 8, %s2318_s20 }
 0x13c   : > { %s2348_s16 = sld [smem:[#allocation6 + %s245_s0]]  ;;  %s254_s27 = sadd.s32 1, %s2318_s20 }
 0x13d   : > { %s2353_s11 = sld [smem:[#allocation6 + %s2318_s20]]  ;;  %s257_s15 = sadd.s32 2, %s2318_s20 }
 0x13e   : > { %s2360_s29 = sld [smem:[#allocation6 + %s251_s28]]  ;;  %s260_s22 = sadd.s32 3, %s2318_s20 }
 0x13f   : > { %s2365_s0 = sld [smem:[#allocation6 + %s254_s27]]  ;;  %s263_s13 = sadd.s32 4, %s2318_s20 }
 0x140   : > { %s2370_s2 = sld [smem:[#allocation6 + %s257_s15]]  ;;  %s266_s4 = sadd.s32 5, %s2318_s20 }
 0x141   : > { %s2374_s28 = sld [smem:[#allocation6 + %s260_s22]]  ;;  %s269_s15 = sadd.s32 6, %s2318_s20 }
 0x142   : > { %2747 = sst [smem:[#allocation34_spill]] %s2348_s16  ;;  %s272_s22 = sadd.s32 7, %s2318_s20 }
 0x143   : > { %s2376_s9 = sld [smem:[#allocation6 + %s263_s13]]  ;;  %s1514_s13 = sadd.s32 16, %s2312_s25 }
 0x144   : > { %2748 = sst [smem:[#allocation35_spill]] %s2360_s29 }
 0x145   : > { %s2381_s26 = sld [smem:[#allocation6 + %s266_s4]]  ;;  %s256_s1 = ssub.s32 %s2365_s0, %s2353_s11 }
 0x146   : > { %s2386_s24 = sld [smem:[#allocation6 + %s269_s15]]  ;;  %s259_s3 = ssub.s32 %s2370_s2, %s2353_s11 }
 0x147   : > { %s2391_s10 = sld [smem:[#allocation6 + %s272_s22]]  ;;  %s262_s21 = ssub.s32 %s2374_s28, %s2353_s11 }
 0x148   : > { %s277_s14 = sld [smem:[#allocation6 + %s1514_s13]] }
 0x149   : > { %s265_s30 = ssub.s32 %s2376_s9, %s2353_s11 }
 0x14b   : > { %s268_s27 = ssub.s32 %s2381_s26, %s2353_s11 }
 0x14c   : > { %s271_s29 = ssub.s32 %s2386_s24, %s2353_s11 }
 0x14d   : > { %s274_s8 = ssub.s32 %s2391_s10, %s2353_s11 }
 0x14e   : > { %s278_s4 = ssub.s32 %s277_s14, %s2315_s19 }
 0x14f   : > { %p1483_p12 = scmp.le.s32.totalorder %s278_s4, 0 }
 0x150   : > { %s2064_s16 = smov (!%p1483_p12), 0  }
 0x151   : > { %1436 = sbr.rel (%p1483_p12) target bundleno = 356 (0x164), region = 155 }
 0x158 LB: >> { %s285_s15 = scalar_lea.sflag [#allocation3], %s2172_s12  ;;  %s2066_s16 = sphi %s2064_s16, %s282_s16  }
 0x159   : >> { %2022 = dma.done.wait %s285_s15, 16 }
 0x15a   : >> { %2023 = vsyncadd %s285_s15, 4294967280  ;;  %s282_s16 = sadd.s32 1, %s2066_s16  }
 0x15b   : >> { %p281_p13 = scmp.ge.s32.totalorder %s282_s16, %s278_s4 }
 0x15d   : > { %284 = sbr.rel (!%p281_p13) target bundleno = 344 (0x158), region = 161 }
 0x164 PF: > { %s326_s14 = smul.u32 48, %s2172_s12  ;;  %v289_v1 = vlaneseq  ;;  %v2075_v2 = vmov 0.0|0.0   ;;  %s2749_s25 = ssub.s32 %s2324_s5, %s2315_s19  ;;  %vm2076_vm0 = vmmov 0   ;;  %v2077_v4 = vmov 0.0  }
 0x165   : > { %1678 = vmatprep.subr.bf16.mxu0 %v2075_v2  ;;  %1696 = vmatprep.subr.bf16.mxu1 %v2075_v2  ;;  %v295_v3 = vstv %s2749_s25  ;;  %s2750_s12 = ssub.s32 %s2327_s17, %s2315_s19  ;;  %s2751_s20 = ssub.s32 %s2330_s7, %s2315_s19  ;;  %v2078_v26 = vmov 0   ;;  %vm322_vm2 = vcmask 195584   ;;  %v810_v39 = vstv %s256_s1 }
 0x166   : > { %1576 = vmatprep.mubr.msk.f32.mxu0 %vm2076_vm0, %v2077_v4  ;;  %1630 = vmatprep.mubr.msk.f32.mxu1 %vm2076_vm0, %v2077_v4  ;;  %v2416_v5 = vand.u32 127, %v289_v1  ;;  %v298_v6 = vstv %s2750_s12  ;;  %v301_v7 = vstv %s2751_s20  ;;  %s327_s16 = scalar_lea.vmem [#allocation2], %s326_s14  ;;  %v2424_v11 = vshrl.u32 %v289_v1, 7  ;;  %s2752_s5 = ssub.s32 %s2333_s6, %s2315_s19 }
 0x167   : > { %v328_v8 = vld [vmem:[%s327_s16] sm:$0xff]  ;;  %v329_v9 = vld [vmem:[%s327_s16 + $0x8] sm:$0xff]  ;;  %v1489_v10 = vld [vmem:[%s327_s16 + $0x18] sm:$0xff]  ;;  %v304_v12 = vstv %s2752_s5  ;;  %s2753_s17 = ssub.s32 %s2336_s23, %s2315_s19  ;;  %s2754_s7 = ssub.s32 %s2341_s18, %s2315_s19 }
 0x168   : > { %v335_v13 = vand.u32 4294901760, %v328_v8  ;;  %v338_v14 = vand.u32 4294901760, %v329_v9  ;;  %v1490_v15 = vld [vmem:[%s327_s16 + $0x20] sm:$0xff]  ;;  %v849_v16 = vand.u32 4294901760, %v1489_v10  ;;  %v330_v17 = vld [vmem:[%s327_s16 + $0x10] sm:$0xff]  ;;  %v2429_v18 = vld [vmem:[%s327_s16 + $0x28] sm:$0xff]  ;;  %vm296_vm1 = vcmp.ge.s32.totalorder %v2416_v5, %v295_v3 }
 0x169   : > { %v852_v19 = vand.u32 4294901760, %v1490_v15  ;;  %v2432_v20 = vand.u32 4294901760, %v330_v17  ;;  %v307_v21 = vstv %s2753_s17  ;;  %v310_v22 = vstv %s2754_s7  ;;  %s2755_s6 = sld [smem:[#allocation34_spill]]  ;;  %s2756_s22 = sld [smem:[#allocation33_spill]] }
 0x16a   : > { %v2440_v23 = vpack.c.bf16 %v338_v14, %v335_v13  ;;  %v2442_v24 = vsub.f32 %v328_v8, %v335_v13  ;;  %v2445_v25 = vand.u32 4294901760, %v2429_v18  ;;  %v297_v27 = vsel %vm296_vm1, 1, %v2078_v26  ;;  %s2759_s2 = sld [smem:[#allocation35_spill]]  ;;  %s2761_s1 = sld [smem:[#allocation31_spill]] }
 0x16b   : > { %v2447_v28 = vsub.f32 %v329_v9, %v338_v14  ;;  %v2449_v29 = vpack.c.bf16 %v852_v19, %v849_v16  ;;  %v2451_v30 = vsub.f32 %v1489_v10, %v849_v16  ;;  %v2453_v31 = vsub.f32 %v1490_v15, %v852_v19  ;;  %s2763_s24 = sld [smem:[#allocation23_spill]]  ;;  %s2765_s26 = sld [smem:[#allocation37_spill]] }
 0x16c   : > { %1680 = vmatpush3.bf16.msra.mxu0 %v2440_v23  ;;  %vm299_vm3 = vcmp.ge.s32.totalorder %v2416_v5, %v298_v6  ;;  %vm302_vm4 = vcmp.ge.s32.totalorder %v2416_v5, %v301_v7  ;;  %vm305_vm5 = vcmp.ge.s32.totalorder %v2416_v5, %v304_v12  ;;  %vm308_vm6 = vcmp.ge.s32.totalorder %v2416_v5, %v307_v21 }
 0x16d   : > { %1698 = vmatpush3.bf16.msra.mxu1 %v2449_v29  ;;  %1574 = vmatprep.subr.mxu0 %v2077_v4  ;;  %v300_v32 = vsel %vm299_vm3, 2, %v297_v27  ;;  %vm311_vm7 = vcmp.ge.s32.totalorder %v2416_v5, %v310_v22  ;;  %v415_v36 = vand.u32 4294901760, %v2442_v24  ;;  %v422_v38 = vand.u32 4294901760, %v2447_v28 }
 0x16e   : > { %1628 = vmatprep.subr.mxu1 %v2077_v4  ;;  %v303_v35 = vsel %vm302_vm4, 3, %v300_v32  ;;  %v813_v40 = vstv %s259_s3  ;;  %vm811_vm10 = vcmp.ge.s32.totalorder %v2416_v5, %v810_v39  ;;  %v816_v46 = vstv %s262_s21  ;;  %s2762_s21 = sld [smem:[#allocation27_spill]] }
 0x16f   : > { %s2757_s23 = ssub.s32 %s2755_s6, %s2315_s19  ;;  %s2758_s18 = ssub.s32 %s2756_s22, %s2315_s19  ;;  %v306_v37 = vsel %vm305_vm5, 4, %v303_v35  ;;  %v416_v42 = vsub.f32 %v2442_v24, %v415_v36  ;;  %vm814_vm11 = vcmp.ge.s32.totalorder %v2416_v5, %v813_v40  ;;  %v423_v44 = vsub.f32 %v2447_v28, %v422_v38 }
 0x170   : > { %v313_v33 = vstv %s2757_s23  ;;  %v316_v34 = vstv %s2758_s18  ;;  %1575 = vmatpush3.msra.mxu0 %v2432_v20  ;;  %v309_v41 = vsel %vm308_vm6, 5, %v306_v37  ;;  %v812_v45 = vsel %vm811_vm10, 1, %v2078_v26  ;;  %s2760_s3 = ssub.s32 %s2759_s2, %s2353_s11  ;;  %s1341_s19 = sshll.u32 %s2761_s1, 4  ;;  %s2656_s19 = int_to_ptr.vmem [resolvable:$true] %s1341_s19 }
 0x171   : > { %vm314_vm8 = vcmp.ge.s32.totalorder %v2416_v5, %v313_v33  ;;  %vm317_vm9 = vcmp.lt.s32.totalorder %v2416_v5, %v316_v34  ;;  %1629 = vmatpush3.msra.mxu1 %v2445_v25  ;;  %1681 = vmatprep.subr.bf16.mxu0 %v2075_v2  ;;  %v312_v43 = vsel %vm311_vm7, 6, %v309_v41  ;;  %v2499_v47 = vsub.f32 %v330_v17, %v2432_v20  ;;  %s1952_s28 = scalar_lea.vmem %s2656_s19, 256 }
 0x172   : > { %1699 = vmatprep.subr.bf16.mxu1 %v2075_v2  ;;  %v315_v48 = vsel %vm314_vm8, 7, %v312_v43  ;;  %v815_v49 = vsel %vm814_vm11, 2, %v812_v45  ;;  %vm817_vm12 = vcmp.ge.s32.totalorder %v2416_v5, %v816_v46  ;;  %v417_v51 = vand.u32 4294901760, %v416_v42  ;;  %p1953_p1 = scmp.ne.s32.totalorder %s2656_s19, %s1952_s28 }
 0x173   : > { %v318_v50 = vsel %vm317_vm9, %v315_v48, 4294967295  ;;  %v818_v52 = vsel %vm817_vm12, 3, %v815_v49  ;;  %v819_v53 = vstv %s265_s30  ;;  %v822_v54 = vstv %s268_s27  ;;  %s2079_s27 = smov [#allocation7]  }
 0x174   : > { %vm319_vm13 = vcmp.eq.s32.totalorder %v2424_v11, %v318_v50  ;;  %vm820_vm14 = vcmp.ge.s32.totalorder %v2416_v5, %v819_v53  ;;  %v825_v55 = vstv %s271_s29  ;;  %v424_v57 = vand.u32 4294901760, %v423_v44  ;;  %s1515_s10 = sshll.u32 %s2762_s21, 8  ;;  %s2766_s29 = sand.u32 1, %s2763_s24  }
 0x175   : > { %v2519_v56 = vsel %vm319_vm13, 1.0, %v2077_v4  ;;  %v821_v58 = vsel %vm820_vm14, 4, %v818_v52  ;;  %vm823_vm15 = vcmp.ge.s32.totalorder %v2416_v5, %v822_v54  ;;  %vm826_vm1 = vcmp.ge.s32.totalorder %v2416_v5, %v825_v55  ;;  %s2654_s11 = scalar_lea.hbm %s2765_s26, %s1515_s10  ;;  %s1325_s0 = scalar_lea.sflag [#allocation8], %s2766_s29 }
 0x176   : > { %v332_v59 = vsel %vm322_vm2, %v2519_v56, 0  ;;  %v824_v60 = vsel %vm823_vm15, 5, %v821_v58  ;;  %v828_v61 = vstv %s274_s8  ;;  %v831_v0 = vstv %s2760_s3  ;;  %p1954_p2 = pnand %p1953_p1, %p2165_p4  ;;  %s1956_s13 = sshll.u32 %s2079_s27, 4  ;;  %s1957_s13 = int_to_ptr.vmem [resolvable:$false] %s1956_s13 }
 0x177   : > { %v2528_v62 = vsub.f32 %v332_v59, %v332_v59  ;;  %v827_v63 = vsel %vm826_vm1, 6, %v824_v60  ;;  %vm829_vm3 = vcmp.ge.s32.totalorder %v2416_v5, %v828_v61  ;;  %vm832_vm4 = vcmp.lt.s32.totalorder %v2416_v5, %v831_v0  ;;  %s1958_s4 = scalar_lea.vmem %s1957_s13, 512  ;;  %p1959_p5 = scmp.lt.s32.totalorder %s2656_s19, %s1957_s13 }
 0x178   : > { %v830_v1 = vsel %vm829_vm3, 7, %v827_v63  ;;  %v929_v3 = vand.u32 4294901760, %v2451_v30  ;;  %v936_v6 = vand.u32 4294901760, %v2453_v31  ;;  %v429_v9 = vand.u32 4294901760, %v2499_v47  ;;  %p1955_p3 = pneg %p1954_p2  ;;  %p1960_p6 = scmp.lt.s32.totalorder %s1958_s4, %s1952_s28 }
 0x179   : > { %v404_v7 = vand.u32 4294901760, %v2528_v62  ;;  %v833_v8 = vsel %vm832_vm4, %v830_v1, 4294967295  ;;  %v2541_v10 = vsub.f32 %v2429_v18, %v2445_v25  ;;  %v1682_v15 = vpack.c.bf16 %v424_v57, %v417_v51 }
 0x17a   : > { %vm834_vm5 = vcmp.eq.s32.totalorder %v2424_v11, %v833_v8  ;;  %v930_v12 = vsub.f32 %v2451_v30, %v929_v3  ;;  %v937_v5 = vsub.f32 %v2453_v31, %v936_v6  ;;  %v430_v11 = vsub.f32 %v2499_v47, %v429_v9  ;;  %p1961_p7 = por %p1960_p6, %p1959_p5 }
 0x17b   : > { %v405_v13 = vsub.f32 %v2528_v62, %v404_v7  ;;  %v2554_v14 = vsel %vm834_vm5, 1.0, %v2077_v4  ;;  %v943_v22 = vand.u32 4294901760, %v2541_v10  ;;  %v323_v26 = vsel %vm322_vm2, %v2519_v56, 0.0 }
 0x17c   : > { %v846_v16 = vsel %vm322_vm2, %v2554_v14, 0  ;;  %v931_v19 = vand.u32 4294901760, %v930_v12  ;;  %v938_v21 = vand.u32 4294901760, %v937_v5  ;;  %324 = vadd.xlane.f32.xlu0 %v323_v26  ;;  %v431_v32 = vand.u32 4294901760, %v430_v11  ;;  %p1962_p9 = pnand %p1961_p7, %p1955_p3 }
 0x17d   : > { %v406_v17 = vand.u32 4294901760, %v405_v13  ;;  %v917_v18 = vsub.f32 %v846_v16, %v846_v16  ;;  %v837_v33 = vsel %vm322_vm2, %v2554_v14, 0.0  ;;  %v944_v37 = vsub.f32 %v2541_v10, %v943_v22 }
 0x17e   : > { %v1700_v35 = vpack.c.bf16 %v938_v21, %v931_v19  ;;  %v1685_v40 = vpack.c.bf16 %v2447_v28, %v2442_v24  ;;  %v1703_v42 = vpack.c.bf16 %v2453_v31, %v2451_v30  ;;  %v1691_v43 = vpack.c.bf16 %v422_v38, %v415_v36 }
 0x17f   : > { %1577 = vmatmul.mubr.f32.vlgmr.msra.gmra.mrb[0].mxu0 %v406_v17  ;;  %v918_v27 = vand.u32 4294901760, %v917_v18  ;;  %v945_v41 = vand.u32 4294901760, %v944_v37  ;;  %v1709_v24 = vpack.c.bf16 %v936_v6, %v929_v3 }
 0x180   : > { %1683 = vmatpush3.bf16.msra.mxu0 %v1682_v15  ;;  %1585 = vmatprep.mubr.msk.f32.mxu0 %vm2076_vm0, %v2077_v4 }
 0x181   : > { %v919_v34 = vsub.f32 %v917_v18, %v918_v27  ;;  %1583 = vmatprep.subr.mxu0 %v2077_v4  ;;  %838 = vadd.xlane.f32.xlu0 %v837_v33 }
 0x183   : > { %v920_v39 = vand.u32 4294901760, %v919_v34 }
 0x184   : > { %1584 = vmatpush3.msra.mxu0 %v431_v32 }
 0x185   : > { %1631 = vmatmul.mubr.f32.vlgmr.msra.gmra.mrb[0].mxu1 %v920_v39  ;;  %1684 = vmatprep.subr.bf16.mxu0 %v2075_v2 }
 0x186   : > { %1701 = vmatpush3.bf16.msra.mxu1 %v1700_v35  ;;  %1639 = vmatprep.mubr.msk.f32.mxu1 %vm2076_vm0, %v2077_v4 }
 0x187   : > { %1637 = vmatprep.subr.mxu1 %v2077_v4  ;;  %1586 = vmatmul.mubr.msk.f32.vlgmr.msra.gmra.mrb[0].mxu0 %vm322_vm2, %v2519_v56 }
 0x188   : > { %1686 = vmatpush3.bf16.msra.mxu0 %v1685_v40  ;;  %1594 = vmatprep.mubr.msk.f32.mxu0 %vm2076_vm0, %v2077_v4 }
 0x189   : > { %1592 = vmatprep.subr.mxu0 %v2077_v4 }
 0x18a   : > { %1638 = vmatpush3.msra.mxu1 %v945_v41 }
 0x18b   : > { %1702 = vmatprep.subr.bf16.mxu1 %v2075_v2 }
 0x18c   : > { %1593 = vmatpush3.msra.mxu0 %v2499_v47 }
 0x18d   : > { %1640 = vmatmul.mubr.msk.f32.vlgmr.msra.gmra.mrb[0].mxu1 %vm322_vm2, %v2554_v14  ;;  %1687 = vmatprep.subr.bf16.mxu0 %v2075_v2 }
 0x18e   : > { %1704 = vmatpush3.bf16.msra.mxu1 %v1703_v42  ;;  %1648 = vmatprep.mubr.msk.f32.mxu1 %vm2076_vm0, %v2077_v4 }
 0x18f   : > { %1646 = vmatprep.subr.mxu1 %v2077_v4  ;;  %1595 = vmatmul.mubr.f32.vlgmr.msra.gmra.mrb[0].mxu0 %v2528_v62 }
 0x190   : > { %1689 = vmatpush3.bf16.msra.mxu0 %v2440_v23  ;;  %1603 = vmatprep.mubr.msk.f32.mxu0 %vm2076_vm0, %v2077_v4 }
 0x191   : > { %1601 = vmatprep.subr.mxu0 %v2077_v4 }
 0x192   : > { %1647 = vmatpush3.msra.mxu1 %v2541_v10 }
 0x193   : > { %1705 = vmatprep.subr.bf16.mxu1 %v2075_v2 }
 0x194   : > { %1602 = vmatpush3.msra.mxu0 %v2432_v20 }
 0x195   : > { %1649 = vmatmul.mubr.f32.vlgmr.msra.gmra.mrb[0].mxu1 %v917_v18  ;;  %1690 = vmatprep.subr.bf16.mxu0 %v2075_v2 }
 0x196   : > { %1707 = vmatpush3.bf16.msra.mxu1 %v2449_v29  ;;  %1657 = vmatprep.mubr.msk.f32.mxu1 %vm2076_vm0, %v2077_v4 }
 0x197   : > { %1655 = vmatprep.subr.mxu1 %v2077_v4  ;;  %1604 = vmatmul.mubr.f32.vlgmr.msra.gmra.mrb[0].mxu0 %v404_v7 }
 0x198   : > { %1692 = vmatpush3.bf16.msra.mxu0 %v1691_v43  ;;  %1612 = vmatprep.mubr.msk.f32.mxu0 %vm2076_vm0, %v2077_v4 }
 0x199   : > { %1610 = vmatprep.subr.mxu0 %v2077_v4 }
 0x19a   : > { %1656 = vmatpush3.msra.mxu1 %v2445_v25 }
 0x19b   : > { %1708 = vmatprep.subr.bf16.mxu1 %v2075_v2 }
 0x19c   : > { %1611 = vmatpush3.msra.mxu0 %v429_v9 }
 0x19d   : > { %1658 = vmatmul.mubr.f32.vlgmr.msra.gmra.mrb[0].mxu1 %v918_v27  ;;  %1693 = vmatprep.subr.bf16.mxu0 %v2075_v2 }
 0x19e   : > { %1710 = vmatpush3.bf16.msra.mxu1 %v1709_v24  ;;  %1666 = vmatprep.mubr.msk.f32.mxu1 %vm2076_vm0, %v2077_v4 }
 0x19f   : > { %1664 = vmatprep.subr.mxu1 %v2077_v4  ;;  %1613 = vmatmul.mubr.msk.f32.vlgmr.msra.gmra.mrb[0].mxu0 %vm322_vm2, %v2519_v56 }
 0x1a0   : > { %1695 = vmatpush3.bf16.msra.mxu0 %v2440_v23  ;;  %1621 = vmatprep.mubr.msk.f32.mxu0 %vm2076_vm0, %v2077_v4 }
 0x1a1   : > { %1619 = vmatprep.subr.mxu0 %v2077_v4 }
 0x1a2   : > { %1665 = vmatpush3.msra.mxu1 %v943_v22 }
 0x1a3   : > { %1711 = vmatprep.subr.bf16.mxu1 %v2075_v2 }
 0x1a4   : > { %1620 = vmatpush3.msra.mxu0 %v2432_v20 }
 0x1a5   : > { %1667 = vmatmul.mubr.msk.f32.vlgmr.msra.gmra.mrb[0].mxu1 %vm322_vm2, %v2554_v14 }
 0x1a6   : > { %1713 = vmatpush3.bf16.msra.mxu1 %v2449_v29  ;;  %1675 = vmatprep.mubr.msk.f32.mxu1 %vm2076_vm0, %v2077_v4 }
 0x1a7   : > { %1673 = vmatprep.subr.mxu1 %v2077_v4  ;;  %1622 = vmatmul.mubr.msk.f32.vlgmr.msra.gmra.mrb[0].mxu0 %vm322_vm2, %v2519_v56 }
 0x1aa   : > { %1674 = vmatpush3.msra.mxu1 %v2445_v25 }
 0x1ad   : > { %1676 = vmatmul.mubr.msk.f32.vlgmr.msra.gmra.mrb[0].mxu1 %vm322_vm2, %v2554_v14 }
 0x209   : > { %v325_v2 = vpop.xlane.xlu0 %324 }
 0x20a   : > { %v806_v20 = vmax.f32 %v325_v2, 1.0 }
 0x20c   : > { %1828 = vrcp.f32 %v806_v20 }
 0x20e   : > { %v839_v23 = vpop.xlane.xlu0 %838 }
 0x20f   : > { %v1320_v28 = vmax.f32 %v839_v23, 1.0 }
 0x211   : > { %1830 = vrcp.f32 %v1320_v28 }
 0x216   : > { %v1829_v29 = vpop.eup %1828 }
 0x21b   : > { %v1831_v36 = vpop.eup %1830 }
 0x27a   : > { %v802_v4 = vpop.f32.mrb[0].mxu0 }
 0x27b   : > { %v808_v30 = vmul.f32 %v1829_v29, %v802_v4  ;;  %v1623_v31 = vpop.f32.mrb[1].mxu0 }
 0x27d   : > { %809 = vst [vmem:[%s2761_s1] sm:$0xff] %v808_v30 }
 0x280   : > { %v1316_v25 = vpop.f32.mrb[0].mxu1 }
 0x281   : > { %v1322_v38 = vmul.f32 %v1831_v36, %v1316_v25  ;;  %v1677_v44 = vpop.f32.mrb[1].mxu1 }
 0x283   : > { %1323 = vst [vmem:[%s2761_s1 + $0x8] sm:$0xff] %v1322_v38 }
 0x284   : > { %1965 = shalt.err (!%p1962_p9)
}
 0x285   : > { %s1966_s15 = scalar_lea.hbm %s2654_s11, 256  ;;  %s1970_s12 = scalar_lea.hbm %s2765_s26, 1024 }
 0x286   : > { %p1967_p0 = scmp.ne.s32.totalorder %s2654_s11, %s1966_s15  ;;  %p1971_p10 = scmp.lt.u32.totalorder %s2654_s11, %s2765_s26 }
 0x287   : > { %p1972_p12 = scmp.lt.u32.totalorder %s1970_s12, %s1966_s15  ;;  %p1974_p1 = scmp.lt.u32.totalorder %s1966_s15, %s2654_s11 }
 0x288   : > { %p1968_p11 = pnand %p1967_p0, %p2165_p4 }
 0x289   : > { %p1973_p13 = por %p1972_p12, %p1971_p10 }
 0x28a   : > { %p1969_p8 = pneg %p1968_p11 }
 0x28b   : > { %p1975_p2 = por %p1974_p1, %p1973_p13 }
 0x28d   : > { %p1976_p3 = pnand %p1975_p2, %p1969_p8 }
 0x28f   : > { %1979 = shalt.err (!%p1976_p3)
}
 0x290   : > { %1734 = dma.vmem_to_hbm [thread:$0]  (%p2165_p4), %s2656_s19, 256, %s2654_s11, %s1325_s0  }
 0x291 PF: > { %s2767_s5 = sld [smem:[#allocation24_spill]]  ;;  %s2768_s17 = sld [smem:[#allocation22_spill]] }
 0x292   : > { %s2769_s7 = sld [smem:[#allocation28_spill]] }
 0x297   : > { %p1740_p5 = scmp.ge.s32.totalorder %s2767_s5, 1  ;;  %s1353_s6 = sand.u32 1, %s2768_s17  }
 0x298   : > { %p2770_p6 = scmp.ne.s32.totalorder %s2769_s7, 0  ;;  %s1354_s22 = scalar_lea.sflag [#allocation8], %s1353_s6 }
 0x29a   : > { %p1737_p7 = pnand %p1740_p5, %p2770_p6 }
 0x29c   : > { %2025 = dma.done.wait (!%p1737_p7), %s1354_s22, 256  }
 0x29d   : > { %2027 = vsyncadd (!%p1737_p7), %s1354_s22, 4294967040  ;;  %s26_s24 = sadd.s32 1, %s2767_s5   ;;  %s2771_s1 = sld [smem:[#allocation23_spill]] }
 0x29e   : > { %p23_p9 = scmp.ge.s32.totalorder %s26_s24, 5   ;;  %s2772_s21 = sld [smem:[#allocation29_spill]] }
 0x29f   : > { %s2773_s22 = sld [smem:[#allocation25_spill]]  ;;  %s2774_s23 = sld [smem:[#allocation26_spill]] }
 0x2a0   :  { %25 = sbr.rel (!%p23_p9) target bundleno = 30 (0x1e), region = 172 }
 0x2a7   :  { %1359 = vsyncpa [#allocation8], 1 }
 0x2a8   :  { %1361 = vsyncpa [#allocation8 + $0x1], 1 }
 0x2a9   :  { %1362 = vsyncmov [#allocation3] }
 0x2ac   :  { %s1363_s18 = vpop.sfrf %1362 }
 0x2ad   :  { %p1501_p4 = scmp.ne.s32.totalorder %s1363_s18, 0 }
 0x2af   :  { %1367 = shalt.err (%p1501_p4)  }
 0x2b0   :  { %1369 = vsyncmov [#allocation3 + $0x1] }
 0x2b3   :  { %s1370_s2 = vpop.sfrf %1369 }
 0x2b4   :  { %p1502_p0 = scmp.ne.s32.totalorder %s1370_s2, 0 }
 0x2b6   :  { %1374 = shalt.err (%p1502_p0)  }

</bundles_post_ra>
